<compile_context>
chip_gen: v5e
topology: v5e:2x2
jax: 0.10.0
libtpu: 0.0.40
codegen_flags: <defaults>
</compile_context>

<pallas_src>
import numpy as np
import jax
import jax.numpy as jnp
from jax import lax
from jax.experimental import pallas as pl
from jax.experimental.pallas import tpu as pltpu


# ----------------------------------------------------------------------------
# Constant structural matrices (glue; computed once in numpy).  No HWxHW shift
# matrices anymore -- only small pooling / broadcast matrices and 9 tap masks.
# ----------------------------------------------------------------------------
def _structural_mats(H, W):
    HW = H * W
    p_row = np.zeros((HW, H), np.float32)   # AvgPool over width  per row  (PAM query_pool)
    p_col = np.zeros((HW, W), np.float32)   # AvgPool over height per col  (PAM key_pool)
    e_row = np.zeros((H, HW), np.float32)   # broadcast (.,H) -> (.,HW) by row
    e_col = np.zeros((W, HW), np.float32)   # broadcast (.,W) -> (.,HW) by col
    for i in range(H):
        for j in range(W):
            hw = i * W + j
            p_row[hw, i] = 1.0 / W
            p_col[hw, j] = 1.0 / H
            e_row[i, hw] = 1.0
            e_col[j, hw] = 1.0
    # 0/1 validity mask per 3x3 tap (zero padding): tapmask[t, i*W+j] == 1 iff
    # (i + ky-1, j + kx-1) is inside the image for t = ky*3 + kx.
    tapmask = np.zeros((9, HW), np.float32)
    for t in range(9):
        dy, dx = t // 3 - 1, t % 3 - 1
        for i in range(H):
            for j in range(W):
                if 0 <= i + dy < H and 0 <= j + dx < W:
                    tapmask[t, i * W + j] = 1.0
    return tuple(jnp.asarray(a) for a in (p_row, p_col, e_row, e_col, tapmask))


def _choose_bblk(B, C):
    """Largest batch block that divides B, keeps M = b_blk*C modest and 8-aligned."""
    cands = [d for d in range(1, B + 1) if B % d == 0 and d * C <= 512]
    aligned = [d for d in cands if (d * C) % 8 == 0]
    if aligned:
        return max(aligned)
    return B   # block first-dim equals the full array dim -> always a legal block


# ----------------------------------------------------------------------------
# Pallas kernel: one batch block (b_blk images) per grid step.
# ----------------------------------------------------------------------------
def _make_kernel(C, H, W, b_blk):
    HW = H * W
    M = b_blk * C
    f32 = jnp.float32
    # flat-index displacement of each 3x3 tap, tap order t = ky*3 + kx
    taps = [(ky - 1) * W + (kx - 1) for ky in range(3) for kx in range(3)]

    def shift_flat(a, d):
        # result[:, p] = a[:, (p + d) mod HW]; wrapped / out-of-image positions are
        # zeroed by the caller's tap mask.  Static lane rotation (== jnp.roll(a, -d)).
        if d == 0:
            return a
        return jnp.concatenate([a[:, d:], a[:, :d]], axis=1)

    def kernel(x_ref, p_row_ref, p_col_ref, e_row_ref, e_col_ref,
               wq_pa_ref, bq_pa_ref, wk_pa_ref, bk_pa_ref,
               wv_ref, bv_ref, wqk_ca_ref, bqk_ca_ref,
               eye_ref, mask_ref, w_big_ref, b_out_ref,
               out_ref):
        x = x_ref[...].astype(f32)                                           # (M, HW)

        # ---- both value 1x1 convs in one matmul (gammas pre-folded on host) ----
        v_cat = jnp.dot(wv_ref[...], x, preferred_element_type=f32) + bv_ref[...]  # (2M, HW)
        v_pa = v_cat[:M]                                                     # gamma_pa * value_pa(x)
        v_ca = v_cat[M:]                                                     # gamma_ca * value_ca(x)

        # ---------------- PAM (position attention) ----------------
        # pool first (pooling commutes with the 1x1 conv) -> tiny projections
        x_row = jnp.dot(x, p_row_ref[...], preferred_element_type=f32)       # (M, H) mean over width
        x_col = jnp.dot(x, p_col_ref[...], preferred_element_type=f32)       # (M, W) mean over height
        q_pool = jnp.dot(wq_pa_ref[...], x_row, preferred_element_type=f32) + bq_pa_ref[...]
        k_pool = jnp.dot(wk_pa_ref[...], x_col, preferred_element_type=f32) + bk_pa_ref[...]
        energy = (jnp.dot(q_pool, e_row_ref[...], preferred_element_type=f32) *
                  jnp.dot(k_pool, e_col_ref[...], preferred_element_type=f32))     # (M, HW)
        m = jnp.max(energy, axis=-1, keepdims=True)
        ex = jnp.exp(energy - m)
        attn = ex * pl.reciprocal(jnp.sum(ex, axis=-1, keepdims=True), approx=True)
        pa_att = v_pa * attn + x                                             # (M, HW)

        # ---------------- CAM (channel attention) ----------------
        x_mean = jnp.mean(x, axis=-1, keepdims=True)                         # (M, 1)
        qk = jnp.dot(wqk_ca_ref[...], x_mean, preferred_element_type=f32) + bqk_ca_ref[...]
        q_avg = qk[:M]                                                       # (M, 1)
        k_avg = qk[M:]                                                       # (M, 1)
        ca_att = x
        for b in range(b_blk):      # static unroll; channel attention is per-image
            lo = b * C
            qb = q_avg[lo:lo + C]                                            # (C, 1)
            kb = k_avg[lo:lo + C]                                            # (C, 1)
            e_c = lax.dot_general(qb, kb, (((1,), (1,)), ((), ())),
                                  preferred_element_type=f32)                # (C, C) outer product
            m_c = jnp.max(jnp.max(e_c, axis=-1, keepdims=True), axis=0, keepdims=True)
            ex_c = jnp.exp(e_c - m_c)
            den = jnp.sum(jnp.sum(ex_c, axis=-1, keepdims=True), axis=0, keepdims=True)
            attn_c = ex_c / den                                              # softmax over C*C
            contrib = jnp.dot(attn_c, v_ca[lo:lo + C], preferred_element_type=f32)  # (C, HW)
            # place the C rows back at offset b*C with an identity-column matmul
            # (avoids an unaligned sublane concatenate)
            ca_att = ca_att + jnp.dot(eye_ref[:, lo:lo + C], contrib,
                                      preferred_element_type=f32)

        # ------ fused 3x3 convs: 9 masked lane-rolls + ONE weight matmul ------
        cat = jnp.concatenate([pa_att, ca_att], axis=0)                      # (2M, HW)
        masks = mask_ref[...]                                                # (9, HW)
        shifted = [shift_flat(cat, taps[t]) * masks[t:t + 1, :] for t in range(9)]
        big = jnp.concatenate(shifted, axis=0)                               # (18M, HW)
        out = jnp.dot(w_big_ref[...], big, preferred_element_type=f32) + b_out_ref[...]
        out_ref[...] = out.astype(out_ref.dtype)

    return kernel


# ----------------------------------------------------------------------------
# Wrapper.
# ----------------------------------------------------------------------------
def pam_and_cam_pallas(x, params, b_blk=None):
    B, C, H, W = x.shape
    HW = H * W
    if b_blk is None:
        b_blk = _choose_bblk(B, C)
    assert B % b_blk == 0, (B, b_blk)
    M = b_blk * C
    n_blk = B // b_blk

    p_row, p_col, e_row, e_col, tapmask = _structural_mats(H, W)

    f32 = jnp.float32
    eye_b = jnp.eye(b_blk, dtype=f32)

    def bd(w):        # block-diagonal weight: apply (C,C) per image of the batch block
        return jnp.kron(eye_b, w.astype(f32))

    def bt(b):        # bias tiled over the batch block -> (M, 1)
        return jnp.tile(b.astype(f32), (b_blk, 1))

    g_pa = params['gamma_pa'][0, 0]
    g_ca = params['gamma_ca'][0, 0]

    w_qpa, b_qpa = bd(params['wq_pa']), bt(params['bq_pa'])
    w_kpa, b_kpa = bd(params['wk_pa']), bt(params['bk_pa'])
    # gamma folded into the value convs:  gamma*(v * attn) == (gamma*v) * attn
    w_v = jnp.concatenate([bd(g_pa * params['wv_pa']), bd(g_ca * params['wv_ca'])], axis=0)
    b_v = jnp.concatenate([bt(g_pa * params['bv_pa']), bt(g_ca * params['bv_ca'])], axis=0)
    w_qkca = jnp.concatenate([bd(params['wq_ca']), bd(params['wk_ca'])], axis=0)
    b_qkca = jnp.concatenate([bt(params['bq_ca']), bt(params['bk_ca'])], axis=0)

    # fused 3x3-conv weight: out = W_big @ [tap0(pa); tap0(ca); tap1(pa); ...]
    wb_parts = []
    for t in range(9):
        ky, kx = divmod(t, 3)
        wb_parts.append(bd(params['wc_pa'][:, :, ky, kx]))
        wb_parts.append(bd(params['wc_ca'][:, :, ky, kx]))
    w_big = jnp.concatenate(wb_parts, axis=1)                                # (M, 18M)
    b_out = bt(params['bc_pa'] + params['bc_ca'])                            # (M, 1)

    eye_m = jnp.eye(M, dtype=f32)
    x_st = x.reshape(B * C, HW).astype(f32)

    inputs = [x_st, p_row, p_col, e_row, e_col,
              w_qpa, b_qpa, w_kpa, b_kpa,
              w_v, b_v, w_qkca, b_qkca,
              eye_m, tapmask, w_big, b_out]

    def fullspec(a):
        n = a.ndim
        return pl.BlockSpec(a.shape, lambda i, _n=n: (0,) * _n)

    out = pl.pallas_call(
        _make_kernel(C, H, W, b_blk),
        out_shape=jax.ShapeDtypeStruct((B * C, HW), f32),
        grid=(n_blk,),
        in_specs=[pl.BlockSpec((M, HW), lambda i: (i, 0))]
                 + [fullspec(a) for a in inputs[1:]],
        out_specs=pl.BlockSpec((M, HW), lambda i: (i, 0)),
        compiler_params=pltpu.CompilerParams(dimension_semantics=("parallel",)),
    )(*inputs)
    return out.reshape(B, C, H, W)


# ----------------------------------------------------------------------------
# Deterministic parameter init (synthetic; shapes from the module __init__).
# ----------------------------------------------------------------------------
def init_params(key, C):
    keys = jax.random.split(key, 14)
    n = lambda k, shape, s: jax.random.normal(k, shape, jnp.float32) * s
    return dict(
        wq_pa=n(keys[0], (C, C), 0.1), bq_pa=n(keys[1], (C, 1), 0.05),
        wk_pa=n(keys[2], (C, C), 0.1), bk_pa=n(keys[3], (C, 1), 0.05),
        wv_pa=n(keys[4], (C, C), 0.1), bv_pa=n(keys[5], (C, 1), 0.05),
        wq_ca=n(keys[6], (C, C), 0.1), bq_ca=n(keys[7], (C, 1), 0.05),
        wk_ca=n(keys[8], (C, C), 0.1), bk_ca=n(keys[9], (C, 1), 0.05),
        wv_ca=n(keys[10], (C, C), 0.1), bv_ca=n(keys[11], (C, 1), 0.05),
        # torch inits gamma to 0 (attention branch would be a no-op);
        # use nonzero deterministic values so the attention path is exercised.
        gamma_pa=jnp.full((1, 1), 0.5, jnp.float32),
        gamma_ca=jnp.full((1, 1), 0.8, jnp.float32),
        wc_pa=n(keys[12], (C, C, 3, 3), 0.02), bc_pa=jnp.zeros((C, 1), jnp.float32),
        wc_ca=n(keys[13], (C, C, 3, 3), 0.02), bc_ca=jnp.zeros((C, 1), jnp.float32),
    )


# ----------------------------------------------------------------------------
# Pure-JAX reference (mirrors the PyTorch forward, NCHW) for verification.
# ----------------------------------------------------------------------------
def ref_forward(x, params):
    B, C, H, W = x.shape
    HW = H * W

    def conv1x1(xx, w, b):
        return jnp.einsum('oc,bchw->bohw', w, xx) + b[:, 0][None, :, None, None]

    # PAM
    q = conv1x1(x, params['wq_pa'], params['bq_pa'])
    k = conv1x1(x, params['wk_pa'], params['bk_pa'])
    v = conv1x1(x, params['wv_pa'], params['bv_pa'])
    qp = q.mean(axis=3, keepdims=True)                       # (B,C,H,1)
    kp = k.mean(axis=2, keepdims=True)                       # (B,C,1,W)
    energy = (qp @ kp).reshape(B, C, HW)
    attn = jax.nn.softmax(energy, axis=-1).reshape(B, C, H, W)
    pa_att = params['gamma_pa'][0, 0] * (v * attn) + x

    # CAM
    qc = conv1x1(x, params['wq_ca'], params['bq_ca']).mean(axis=(2, 3))   # (B,C)
    kc = conv1x1(x, params['wk_ca'], params['bk_ca']).mean(axis=(2, 3))   # (B,C)
    vc = conv1x1(x, params['wv_ca'], params['bv_ca']).reshape(B, C, HW)
    energy_c = qc[:, :, None] * kc[:, None, :]                            # (B,C,C)
    attn_c = jax.nn.softmax(energy_c.reshape(B, C * C), axis=-1).reshape(B, C, C)
    ca_att = params['gamma_ca'][0, 0] * (attn_c @ vc).reshape(B, C, H, W) + x

    def conv3(xx, w, b):
        y = lax.conv_general_dilated(xx, w, (1, 1), 'SAME',
                                     dimension_numbers=('NCHW', 'OIHW', 'NCHW'))
        return y + b[:, 0][None, :, None, None]

    return conv3(pa_att, params['wc_pa'], params['bc_pa']) + \
           conv3(ca_att, params['wc_ca'], params['bc_ca'])


if __name__ == "__main__":
    B, C, H, W = 2, 4, 16, 16
    key = jax.random.PRNGKey(0)
    kx, kp = jax.random.split(key)
    x = jax.random.normal(kx, (B, C, H, W), jnp.float32)
    params = init_params(kp, C)

    out = pam_and_cam_pallas(x, params)
    out = jax.block_until_ready(out)

    ref = ref_forward(x, params)
    err = float(jnp.max(jnp.abs(out - ref)))
    assert err < 2e-3, f"max abs error too large: {err}"
    print("KERNEL_OK")
</pallas_src>

<mosaic_0001>
module attributes {stable_mosaic.version = 11 : i64} {
  func.func @kernel(%arg0: i32, %arg1: memref<8x256xf32, #tpu.memory_space<vmem>>, %arg2: memref<256x16xf32, #tpu.memory_space<vmem>>, %arg3: memref<256x16xf32, #tpu.memory_space<vmem>>, %arg4: memref<16x256xf32, #tpu.memory_space<vmem>>, %arg5: memref<16x256xf32, #tpu.memory_space<vmem>>, %arg6: memref<8x8xf32, #tpu.memory_space<vmem>>, %arg7: memref<8x1xf32, #tpu.memory_space<vmem>>, %arg8: memref<8x8xf32, #tpu.memory_space<vmem>>, %arg9: memref<8x1xf32, #tpu.memory_space<vmem>>, %arg10: memref<16x8xf32, #tpu.memory_space<vmem>>, %arg11: memref<16x1xf32, #tpu.memory_space<vmem>>, %arg12: memref<16x8xf32, #tpu.memory_space<vmem>>, %arg13: memref<16x1xf32, #tpu.memory_space<vmem>>, %arg14: memref<8x8xf32, #tpu.memory_space<vmem>>, %arg15: memref<9x256xf32, #tpu.memory_space<vmem>>, %arg16: memref<8x144xf32, #tpu.memory_space<vmem>>, %arg17: memref<8x1xf32, #tpu.memory_space<vmem>>, %arg18: memref<8x256xf32, #tpu.memory_space<vmem>>) attributes {dimension_semantics = [#tpu.dimension_semantics<parallel>], iteration_bounds = array<i64: 1>, scalar_prefetch = 0 : i64, scratch_operands = 0 : i64, tpu.core_type = #tpu.core_type<tc>, window_params = [{transform_indices = @transform_0, window_bounds = array<i64: 8, 256>}, {pipeline_mode = #tpu.pipeline_mode<synchronous>, transform_indices = @transform_1, window_bounds = array<i64: 256, 16>}, {pipeline_mode = #tpu.pipeline_mode<synchronous>, transform_indices = @transform_2, window_bounds = array<i64: 256, 16>}, {pipeline_mode = #tpu.pipeline_mode<synchronous>, transform_indices = @transform_3, window_bounds = array<i64: 16, 256>}, {pipeline_mode = #tpu.pipeline_mode<synchronous>, transform_indices = @transform_4, window_bounds = array<i64: 16, 256>}, {pipeline_mode = #tpu.pipeline_mode<synchronous>, transform_indices = @transform_5, window_bounds = array<i64: 8, 8>}, {pipeline_mode = #tpu.pipeline_mode<synchronous>, transform_indices = @transform_6, window_bounds = array<i64: 8, 1>}, {pipeline_mode = #tpu.pipeline_mode<synchronous>, transform_indices = @transform_7, window_bounds = array<i64: 8, 8>}, {pipeline_mode = #tpu.pipeline_mode<synchronous>, transform_indices = @transform_8, window_bounds = array<i64: 8, 1>}, {pipeline_mode = #tpu.pipeline_mode<synchronous>, transform_indices = @transform_9, window_bounds = array<i64: 16, 8>}, {pipeline_mode = #tpu.pipeline_mode<synchronous>, transform_indices = @transform_10, window_bounds = array<i64: 16, 1>}, {pipeline_mode = #tpu.pipeline_mode<synchronous>, transform_indices = @transform_11, window_bounds = array<i64: 16, 8>}, {pipeline_mode = #tpu.pipeline_mode<synchronous>, transform_indices = @transform_12, window_bounds = array<i64: 16, 1>}, {pipeline_mode = #tpu.pipeline_mode<synchronous>, transform_indices = @transform_13, window_bounds = array<i64: 8, 8>}, {pipeline_mode = #tpu.pipeline_mode<synchronous>, transform_indices = @transform_14, window_bounds = array<i64: 9, 256>}, {pipeline_mode = #tpu.pipeline_mode<synchronous>, transform_indices = @transform_15, window_bounds = array<i64: 8, 144>}, {pipeline_mode = #tpu.pipeline_mode<synchronous>, transform_indices = @transform_16, window_bounds = array<i64: 8, 1>}, {transform_indices = @transform_17, window_bounds = array<i64: 8, 256>}]} {
    %c0 = arith.constant 0 : index
    %c0_0 = arith.constant 0 : index
    %0 = vector.load %arg1[%c0, %c0_0] : memref<8x256xf32, #tpu.memory_space<vmem>>, vector<8x256xf32>
    %c0_1 = arith.constant 0 : index
    %c0_2 = arith.constant 0 : index
    %1 = vector.load %arg10[%c0_1, %c0_2] : memref<16x8xf32, #tpu.memory_space<vmem>>, vector<16x8xf32>
    %cst = arith.constant dense<0.000000e+00> : vector<16x256xf32>
    %2 = tpu.matmul %1, %0, %cst {dimension_numbers = #tpu.dot_dimension_numbers<[1], [0], [0], [1], [0, 0, 1, 1], [], []>} : vector<16x8xf32>, vector<8x256xf32>, vector<16x256xf32> -> vector<16x256xf32>
    %c0_3 = arith.constant 0 : index
    %c0_4 = arith.constant 0 : index
    %3 = vector.load %arg11[%c0_3, %c0_4] : memref<16x1xf32, #tpu.memory_space<vmem>>, vector<16x1xf32>
    %4 = vector.broadcast %3 : vector<16x1xf32> to vector<16x256xf32>
    %5 = arith.addf %2, %4 : vector<16x256xf32>
    %6 = vector.extract_strided_slice %5 {offsets = [0, 0], sizes = [8, 256], strides = [1, 1]} : vector<16x256xf32> to vector<8x256xf32>
    %7 = vector.extract_strided_slice %5 {offsets = [8, 0], sizes = [8, 256], strides = [1, 1]} : vector<16x256xf32> to vector<8x256xf32>
    %c0_5 = arith.constant 0 : index
    %c0_6 = arith.constant 0 : index
    %8 = vector.load %arg2[%c0_5, %c0_6] : memref<256x16xf32, #tpu.memory_space<vmem>>, vector<256x16xf32>
    %cst_7 = arith.constant dense<0.000000e+00> : vector<8x16xf32>
    %9 = tpu.matmul %0, %8, %cst_7 {dimension_numbers = #tpu.dot_dimension_numbers<[1], [0], [0], [1], [0, 0, 1, 1], [], []>} : vector<8x256xf32>, vector<256x16xf32>, vector<8x16xf32> -> vector<8x16xf32>
    %c0_8 = arith.constant 0 : index
    %c0_9 = arith.constant 0 : index
    %10 = vector.load %arg3[%c0_8, %c0_9] : memref<256x16xf32, #tpu.memory_space<vmem>>, vector<256x16xf32>
    %cst_10 = arith.constant dense<0.000000e+00> : vector<8x16xf32>
    %11 = tpu.matmul %0, %10, %cst_10 {dimension_numbers = #tpu.dot_dimension_numbers<[1], [0], [0], [1], [0, 0, 1, 1], [], []>} : vector<8x256xf32>, vector<256x16xf32>, vector<8x16xf32> -> vector<8x16xf32>
    %c0_11 = arith.constant 0 : index
    %c0_12 = arith.constant 0 : index
    %12 = vector.load %arg6[%c0_11, %c0_12] : memref<8x8xf32, #tpu.memory_space<vmem>>, vector<8x8xf32>
    %cst_13 = arith.constant dense<0.000000e+00> : vector<8x16xf32>
    %13 = tpu.matmul %12, %9, %cst_13 {dimension_numbers = #tpu.dot_dimension_numbers<[1], [0], [0], [1], [0, 0, 1, 1], [], []>} : vector<8x8xf32>, vector<8x16xf32>, vector<8x16xf32> -> vector<8x16xf32>
    %c0_14 = arith.constant 0 : index
    %c0_15 = arith.constant 0 : index
    %14 = vector.load %arg7[%c0_14, %c0_15] : memref<8x1xf32, #tpu.memory_space<vmem>>, vector<8x1xf32>
    %15 = vector.broadcast %14 : vector<8x1xf32> to vector<8x16xf32>
    %16 = arith.addf %13, %15 : vector<8x16xf32>
    %c0_16 = arith.constant 0 : index
    %c0_17 = arith.constant 0 : index
    %17 = vector.load %arg8[%c0_16, %c0_17] : memref<8x8xf32, #tpu.memory_space<vmem>>, vector<8x8xf32>
    %cst_18 = arith.constant dense<0.000000e+00> : vector<8x16xf32>
    %18 = tpu.matmul %17, %11, %cst_18 {dimension_numbers = #tpu.dot_dimension_numbers<[1], [0], [0], [1], [0, 0, 1, 1], [], []>} : vector<8x8xf32>, vector<8x16xf32>, vector<8x16xf32> -> vector<8x16xf32>
    %c0_19 = arith.constant 0 : index
    %c0_20 = arith.constant 0 : index
    %19 = vector.load %arg9[%c0_19, %c0_20] : memref<8x1xf32, #tpu.memory_space<vmem>>, vector<8x1xf32>
    %20 = vector.broadcast %19 : vector<8x1xf32> to vector<8x16xf32>
    %21 = arith.addf %18, %20 : vector<8x16xf32>
    %c0_21 = arith.constant 0 : index
    %c0_22 = arith.constant 0 : index
    %22 = vector.load %arg4[%c0_21, %c0_22] : memref<16x256xf32, #tpu.memory_space<vmem>>, vector<16x256xf32>
    %cst_23 = arith.constant dense<0.000000e+00> : vector<8x256xf32>
    %23 = tpu.matmul %16, %22, %cst_23 {dimension_numbers = #tpu.dot_dimension_numbers<[1], [0], [0], [1], [0, 0, 1, 1], [], []>} : vector<8x16xf32>, vector<16x256xf32>, vector<8x256xf32> -> vector<8x256xf32>
    %c0_24 = arith.constant 0 : index
    %c0_25 = arith.constant 0 : index
    %24 = vector.load %arg5[%c0_24, %c0_25] : memref<16x256xf32, #tpu.memory_space<vmem>>, vector<16x256xf32>
    %cst_26 = arith.constant dense<0.000000e+00> : vector<8x256xf32>
    %25 = tpu.matmul %21, %24, %cst_26 {dimension_numbers = #tpu.dot_dimension_numbers<[1], [0], [0], [1], [0, 0, 1, 1], [], []>} : vector<8x16xf32>, vector<16x256xf32>, vector<8x256xf32> -> vector<8x256xf32>
    %26 = arith.mulf %23, %25 : vector<8x256xf32>
    %cst_27 = arith.constant dense<0xFF800000> : vector<8xf32>
    %27 = vector.multi_reduction <maximumf>, %26, %cst_27 [1] : vector<8x256xf32> to vector<8xf32>
    %28 = vector.shape_cast %27 : vector<8xf32> to vector<8x1xf32>
    %29 = vector.broadcast %28 : vector<8x1xf32> to vector<8x256xf32>
    %30 = arith.subf %26, %29 : vector<8x256xf32>
    %31 = math.exp %30 : vector<8x256xf32>
    %cst_28 = arith.constant dense<0.000000e+00> : vector<8xf32>
    %32 = vector.multi_reduction <add>, %31, %cst_28 [1] : vector<8x256xf32> to vector<8xf32>
    %33 = vector.shape_cast %32 : vector<8xf32> to vector<8x1xf32>
    %34 = tpu.reciprocal %33 {approx = true} : vector<8x1xf32> -> vector<8x1xf32>
    %35 = vector.broadcast %34 : vector<8x1xf32> to vector<8x256xf32>
    %36 = arith.mulf %31, %35 : vector<8x256xf32>
    %37 = arith.mulf %6, %36 : vector<8x256xf32>
    %38 = arith.addf %37, %0 : vector<8x256xf32>
    %cst_29 = arith.constant dense<0.000000e+00> : vector<8xf32>
    %39 = vector.multi_reduction <add>, %0, %cst_29 [1] : vector<8x256xf32> to vector<8xf32>
    %40 = vector.shape_cast %39 : vector<8xf32> to vector<8x1xf32>
    %cst_30 = arith.constant 2.560000e+02 : f32
    %41 = vector.broadcast %cst_30 : f32 to vector<8x1xf32>
    %42 = arith.divf %40, %41 : vector<8x1xf32>
    %c0_31 = arith.constant 0 : index
    %c0_32 = arith.constant 0 : index
    %43 = vector.load %arg12[%c0_31, %c0_32] : memref<16x8xf32, #tpu.memory_space<vmem>>, vector<16x8xf32>
    %cst_33 = arith.constant dense<0.000000e+00> : vector<16x1xf32>
    %44 = tpu.matmul %43, %42, %cst_33 {dimension_numbers = #tpu.dot_dimension_numbers<[1], [0], [0], [1], [0, 0, 1, 1], [], []>} : vector<16x8xf32>, vector<8x1xf32>, vector<16x1xf32> -> vector<16x1xf32>
    %c0_34 = arith.constant 0 : index
    %c0_35 = arith.constant 0 : index
    %45 = vector.load %arg13[%c0_34, %c0_35] : memref<16x1xf32, #tpu.memory_space<vmem>>, vector<16x1xf32>
    %46 = arith.addf %44, %45 : vector<16x1xf32>
    %47 = vector.extract_strided_slice %46 {offsets = [0, 0], sizes = [8, 1], strides = [1, 1]} : vector<16x1xf32> to vector<8x1xf32>
    %48 = vector.extract_strided_slice %46 {offsets = [8, 0], sizes = [8, 1], strides = [1, 1]} : vector<16x1xf32> to vector<8x1xf32>
    %49 = vector.extract_strided_slice %47 {offsets = [0, 0], sizes = [4, 1], strides = [1, 1]} : vector<8x1xf32> to vector<4x1xf32>
    %50 = vector.extract_strided_slice %48 {offsets = [0, 0], sizes = [4, 1], strides = [1, 1]} : vector<8x1xf32> to vector<4x1xf32>
    %cst_36 = arith.constant dense<0.000000e+00> : vector<4x4xf32>
    %51 = tpu.matmul %49, %50, %cst_36 {dimension_numbers = #tpu.dot_dimension_numbers<[1], [1], [0], [0], [0, 0, 1, 0], [], []>} : vector<4x1xf32>, vector<4x1xf32>, vector<4x4xf32> -> vector<4x4xf32>
    %cst_37 = arith.constant dense<0xFF800000> : vector<4xf32>
    %52 = vector.multi_reduction <maximumf>, %51, %cst_37 [1] : vector<4x4xf32> to vector<4xf32>
    %53 = vector.shape_cast %52 : vector<4xf32> to vector<4x1xf32>
    %cst_38 = arith.constant dense<0xFF800000> : vector<1xf32>
    %54 = vector.multi_reduction <maximumf>, %53, %cst_38 [0] : vector<4x1xf32> to vector<1xf32>
    %55 = vector.shape_cast %54 : vector<1xf32> to vector<1x1xf32>
    %56 = vector.broadcast %55 : vector<1x1xf32> to vector<4x4xf32>
    %57 = arith.subf %51, %56 : vector<4x4xf32>
    %58 = math.exp %57 : vector<4x4xf32>
    %cst_39 = arith.constant dense<0.000000e+00> : vector<4xf32>
    %59 = vector.multi_reduction <add>, %58, %cst_39 [1] : vector<4x4xf32> to vector<4xf32>
    %60 = vector.shape_cast %59 : vector<4xf32> to vector<4x1xf32>
    %cst_40 = arith.constant dense<0.000000e+00> : vector<1xf32>
    %61 = vector.multi_reduction <add>, %60, %cst_40 [0] : vector<4x1xf32> to vector<1xf32>
    %62 = vector.shape_cast %61 : vector<1xf32> to vector<1x1xf32>
    %63 = vector.broadcast %62 : vector<1x1xf32> to vector<4x4xf32>
    %64 = arith.divf %58, %63 : vector<4x4xf32>
    %65 = vector.extract_strided_slice %7 {offsets = [0, 0], sizes = [4, 256], strides = [1, 1]} : vector<8x256xf32> to vector<4x256xf32>
    %cst_41 = arith.constant dense<0.000000e+00> : vector<4x256xf32>
    %66 = tpu.matmul %64, %65, %cst_41 {dimension_numbers = #tpu.dot_dimension_numbers<[1], [0], [0], [1], [0, 0, 1, 1], [], []>} : vector<4x4xf32>, vector<4x256xf32>, vector<4x256xf32> -> vector<4x256xf32>
    %c0_42 = arith.constant 0 : index
    %c0_43 = arith.constant 0 : index
    %67 = vector.load %arg14[%c0_42, %c0_43] : memref<8x8xf32, #tpu.memory_space<vmem>>, vector<8x4xf32>
    %cst_44 = arith.constant dense<0.000000e+00> : vector<8x256xf32>
    %68 = tpu.matmul %67, %66, %cst_44 {dimension_numbers = #tpu.dot_dimension_numbers<[1], [0], [0], [1], [0, 0, 1, 1], [], []>} : vector<8x4xf32>, vector<4x256xf32>, vector<8x256xf32> -> vector<8x256xf32>
    %69 = arith.addf %0, %68 : vector<8x256xf32>
    %70 = vector.extract_strided_slice %47 {offsets = [4, 0], sizes = [4, 1], strides = [1, 1]} : vector<8x1xf32> to vector<4x1xf32>
    %71 = vector.extract_strided_slice %48 {offsets = [4, 0], sizes = [4, 1], strides = [1, 1]} : vector<8x1xf32> to vector<4x1xf32>
    %cst_45 = arith.constant dense<0.000000e+00> : vector<4x4xf32>
    %72 = tpu.matmul %70, %71, %cst_45 {dimension_numbers = #tpu.dot_dimension_numbers<[1], [1], [0], [0], [0, 0, 1, 0], [], []>} : vector<4x1xf32>, vector<4x1xf32>, vector<4x4xf32> -> vector<4x4xf32>
    %cst_46 = arith.constant dense<0xFF800000> : vector<4xf32>
    %73 = vector.multi_reduction <maximumf>, %72, %cst_46 [1] : vector<4x4xf32> to vector<4xf32>
    %74 = vector.shape_cast %73 : vector<4xf32> to vector<4x1xf32>
    %cst_47 = arith.constant dense<0xFF800000> : vector<1xf32>
    %75 = vector.multi_reduction <maximumf>, %74, %cst_47 [0] : vector<4x1xf32> to vector<1xf32>
    %76 = vector.shape_cast %75 : vector<1xf32> to vector<1x1xf32>
    %77 = vector.broadcast %76 : vector<1x1xf32> to vector<4x4xf32>
    %78 = arith.subf %72, %77 : vector<4x4xf32>
    %79 = math.exp %78 : vector<4x4xf32>
    %cst_48 = arith.constant dense<0.000000e+00> : vector<4xf32>
    %80 = vector.multi_reduction <add>, %79, %cst_48 [1] : vector<4x4xf32> to vector<4xf32>
    %81 = vector.shape_cast %80 : vector<4xf32> to vector<4x1xf32>
    %cst_49 = arith.constant dense<0.000000e+00> : vector<1xf32>
    %82 = vector.multi_reduction <add>, %81, %cst_49 [0] : vector<4x1xf32> to vector<1xf32>
    %83 = vector.shape_cast %82 : vector<1xf32> to vector<1x1xf32>
    %84 = vector.broadcast %83 : vector<1x1xf32> to vector<4x4xf32>
    %85 = arith.divf %79, %84 : vector<4x4xf32>
    %86 = vector.extract_strided_slice %7 {offsets = [4, 0], sizes = [4, 256], strides = [1, 1]} : vector<8x256xf32> to vector<4x256xf32>
    %cst_50 = arith.constant dense<0.000000e+00> : vector<4x256xf32>
    %87 = tpu.matmul %85, %86, %cst_50 {dimension_numbers = #tpu.dot_dimension_numbers<[1], [0], [0], [1], [0, 0, 1, 1], [], []>} : vector<4x4xf32>, vector<4x256xf32>, vector<4x256xf32> -> vector<4x256xf32>
    %c0_51 = arith.constant 0 : index
    %c4 = arith.constant 4 : index
    %88 = vector.load %arg14[%c0_51, %c4] : memref<8x8xf32, #tpu.memory_space<vmem>>, vector<8x4xf32>
    %cst_52 = arith.constant dense<0.000000e+00> : vector<8x256xf32>
    %89 = tpu.matmul %88, %87, %cst_52 {dimension_numbers = #tpu.dot_dimension_numbers<[1], [0], [0], [1], [0, 0, 1, 1], [], []>} : vector<8x4xf32>, vector<4x256xf32>, vector<8x256xf32> -> vector<8x256xf32>
    %90 = arith.addf %69, %89 : vector<8x256xf32>
    %91 = tpu.concatenate %38, %90 in 0 : vector<8x256xf32>, vector<8x256xf32> -> vector<16x256xf32>
    %c0_53 = arith.constant 0 : index
    %c0_54 = arith.constant 0 : index
    %92 = vector.load %arg15[%c0_53, %c0_54] : memref<9x256xf32, #tpu.memory_space<vmem>>, vector<9x256xf32>
    %93 = vector.extract_strided_slice %91 {offsets = [0, 239], sizes = [16, 17], strides = [1, 1]} : vector<16x256xf32> to vector<16x17xf32>
    %94 = vector.extract_strided_slice %91 {offsets = [0, 0], sizes = [16, 239], strides = [1, 1]} : vector<16x256xf32> to vector<16x239xf32>
    %95 = tpu.concatenate %93, %94 in 1 : vector<16x17xf32>, vector<16x239xf32> -> vector<16x256xf32>
    %96 = vector.extract_strided_slice %92 {offsets = [0, 0], sizes = [1, 256], strides = [1, 1]} : vector<9x256xf32> to vector<1x256xf32>
    %97 = vector.broadcast %96 : vector<1x256xf32> to vector<16x256xf32>
    %98 = arith.mulf %95, %97 : vector<16x256xf32>
    %99 = vector.extract_strided_slice %91 {offsets = [0, 240], sizes = [16, 16], strides = [1, 1]} : vector<16x256xf32> to vector<16x16xf32>
    %100 = vector.extract_strided_slice %91 {offsets = [0, 0], sizes = [16, 240], strides = [1, 1]} : vector<16x256xf32> to vector<16x240xf32>
    %101 = tpu.concatenate %99, %100 in 1 : vector<16x16xf32>, vector<16x240xf32> -> vector<16x256xf32>
    %102 = vector.extract_strided_slice %92 {offsets = [1, 0], sizes = [1, 256], strides = [1, 1]} : vector<9x256xf32> to vector<1x256xf32>
    %103 = vector.broadcast %102 : vector<1x256xf32> to vector<16x256xf32>
    %104 = arith.mulf %101, %103 : vector<16x256xf32>
    %105 = vector.extract_strided_slice %91 {offsets = [0, 241], sizes = [16, 15], strides = [1, 1]} : vector<16x256xf32> to vector<16x15xf32>
    %106 = vector.extract_strided_slice %91 {offsets = [0, 0], sizes = [16, 241], strides = [1, 1]} : vector<16x256xf32> to vector<16x241xf32>
    %107 = tpu.concatenate %105, %106 in 1 : vector<16x15xf32>, vector<16x241xf32> -> vector<16x256xf32>
    %108 = vector.extract_strided_slice %92 {offsets = [2, 0], sizes = [1, 256], strides = [1, 1]} : vector<9x256xf32> to vector<1x256xf32>
    %109 = vector.broadcast %108 : vector<1x256xf32> to vector<16x256xf32>
    %110 = arith.mulf %107, %109 : vector<16x256xf32>
    %111 = vector.extract_strided_slice %91 {offsets = [0, 255], sizes = [16, 1], strides = [1, 1]} : vector<16x256xf32> to vector<16x1xf32>
    %112 = vector.extract_strided_slice %91 {offsets = [0, 0], sizes = [16, 255], strides = [1, 1]} : vector<16x256xf32> to vector<16x255xf32>
    %113 = tpu.concatenate %111, %112 in 1 : vector<16x1xf32>, vector<16x255xf32> -> vector<16x256xf32>
    %114 = vector.extract_strided_slice %92 {offsets = [3, 0], sizes = [1, 256], strides = [1, 1]} : vector<9x256xf32> to vector<1x256xf32>
    %115 = vector.broadcast %114 : vector<1x256xf32> to vector<16x256xf32>
    %116 = arith.mulf %113, %115 : vector<16x256xf32>
    %117 = vector.extract_strided_slice %92 {offsets = [4, 0], sizes = [1, 256], strides = [1, 1]} : vector<9x256xf32> to vector<1x256xf32>
    %118 = vector.broadcast %117 : vector<1x256xf32> to vector<16x256xf32>
    %119 = arith.mulf %91, %118 : vector<16x256xf32>
    %120 = vector.extract_strided_slice %91 {offsets = [0, 1], sizes = [16, 255], strides = [1, 1]} : vector<16x256xf32> to vector<16x255xf32>
    %121 = vector.extract_strided_slice %91 {offsets = [0, 0], sizes = [16, 1], strides = [1, 1]} : vector<16x256xf32> to vector<16x1xf32>
    %122 = tpu.concatenate %120, %121 in 1 : vector<16x255xf32>, vector<16x1xf32> -> vector<16x256xf32>
    %123 = vector.extract_strided_slice %92 {offsets = [5, 0], sizes = [1, 256], strides = [1, 1]} : vector<9x256xf32> to vector<1x256xf32>
    %124 = vector.broadcast %123 : vector<1x256xf32> to vector<16x256xf32>
    %125 = arith.mulf %122, %124 : vector<16x256xf32>
    %126 = vector.extract_strided_slice %91 {offsets = [0, 15], sizes = [16, 241], strides = [1, 1]} : vector<16x256xf32> to vector<16x241xf32>
    %127 = vector.extract_strided_slice %91 {offsets = [0, 0], sizes = [16, 15], strides = [1, 1]} : vector<16x256xf32> to vector<16x15xf32>
    %128 = tpu.concatenate %126, %127 in 1 : vector<16x241xf32>, vector<16x15xf32> -> vector<16x256xf32>
    %129 = vector.extract_strided_slice %92 {offsets = [6, 0], sizes = [1, 256], strides = [1, 1]} : vector<9x256xf32> to vector<1x256xf32>
    %130 = vector.broadcast %129 : vector<1x256xf32> to vector<16x256xf32>
    %131 = arith.mulf %128, %130 : vector<16x256xf32>
    %132 = vector.extract_strided_slice %91 {offsets = [0, 16], sizes = [16, 240], strides = [1, 1]} : vector<16x256xf32> to vector<16x240xf32>
    %133 = vector.extract_strided_slice %91 {offsets = [0, 0], sizes = [16, 16], strides = [1, 1]} : vector<16x256xf32> to vector<16x16xf32>
    %134 = tpu.concatenate %132, %133 in 1 : vector<16x240xf32>, vector<16x16xf32> -> vector<16x256xf32>
    %135 = vector.extract_strided_slice %92 {offsets = [7, 0], sizes = [1, 256], strides = [1, 1]} : vector<9x256xf32> to vector<1x256xf32>
    %136 = vector.broadcast %135 : vector<1x256xf32> to vector<16x256xf32>
    %137 = arith.mulf %134, %136 : vector<16x256xf32>
    %138 = vector.extract_strided_slice %91 {offsets = [0, 17], sizes = [16, 239], strides = [1, 1]} : vector<16x256xf32> to vector<16x239xf32>
    %139 = vector.extract_strided_slice %91 {offsets = [0, 0], sizes = [16, 17], strides = [1, 1]} : vector<16x256xf32> to vector<16x17xf32>
    %140 = tpu.concatenate %138, %139 in 1 : vector<16x239xf32>, vector<16x17xf32> -> vector<16x256xf32>
    %141 = vector.extract_strided_slice %92 {offsets = [8, 0], sizes = [1, 256], strides = [1, 1]} : vector<9x256xf32> to vector<1x256xf32>
    %142 = vector.broadcast %141 : vector<1x256xf32> to vector<16x256xf32>
    %143 = arith.mulf %140, %142 : vector<16x256xf32>
    %144 = tpu.concatenate %98, %104, %110, %116, %119, %125, %131, %137, %143 in 0 : vector<16x256xf32>, vector<16x256xf32>, vector<16x256xf32>, vector<16x256xf32>, vector<16x256xf32>, vector<16x256xf32>, vector<16x256xf32>, vector<16x256xf32>, vector<16x256xf32> -> vector<144x256xf32>
    %c0_55 = arith.constant 0 : index
    %c0_56 = arith.constant 0 : index
    %145 = vector.load %arg16[%c0_55, %c0_56] : memref<8x144xf32, #tpu.memory_space<vmem>>, vector<8x144xf32>
    %cst_57 = arith.constant dense<0.000000e+00> : vector<8x256xf32>
    %146 = tpu.matmul %145, %144, %cst_57 {dimension_numbers = #tpu.dot_dimension_numbers<[1], [0], [0], [1], [0, 0, 1, 1], [], []>} : vector<8x144xf32>, vector<144x256xf32>, vector<8x256xf32> -> vector<8x256xf32>
    %c0_58 = arith.constant 0 : index
    %c0_59 = arith.constant 0 : index
    %147 = vector.load %arg17[%c0_58, %c0_59] : memref<8x1xf32, #tpu.memory_space<vmem>>, vector<8x1xf32>
    %148 = vector.broadcast %147 : vector<8x1xf32> to vector<8x256xf32>
    %149 = arith.addf %146, %148 : vector<8x256xf32>
    %c0_60 = arith.constant 0 : index
    %c0_61 = arith.constant 0 : index
    %150 = vector.load %arg18[%c0_60, %c0_61] : memref<8x256xf32, #tpu.memory_space<vmem>>, vector<8x256xf32>
    tpu.vector_store %arg18[%c0_60, %c0_61], %149 {strides = array<i32>} : memref<8x256xf32, #tpu.memory_space<vmem>>, vector<8x256xf32>,
    return
  }
  func.func @transform_0(%arg0: i32) -> (i32, i32) {
    %c0_i32 = arith.constant 0 : i32
    %c0_i32_0 = arith.constant 0 : i32
    return %arg0, %c0_i32 : i32, i32
  }
  func.func @transform_1(%arg0: i32) -> (i32, i32) {
    %c0_i32 = arith.constant 0 : i32
    %c0_i32_0 = arith.constant 0 : i32
    %c0_i32_1 = arith.constant 0 : i32
    return %c0_i32, %c0_i32_0 : i32, i32
  }
  func.func @transform_2(%arg0: i32) -> (i32, i32) {
    %c0_i32 = arith.constant 0 : i32
    %c0_i32_0 = arith.constant 0 : i32
    %c0_i32_1 = arith.constant 0 : i32
    return %c0_i32, %c0_i32_0 : i32, i32
  }
  func.func @transform_3(%arg0: i32) -> (i32, i32) {
    %c0_i32 = arith.constant 0 : i32
    %c0_i32_0 = arith.constant 0 : i32
    %c0_i32_1 = arith.constant 0 : i32
    return %c0_i32, %c0_i32_0 : i32, i32
  }
  func.func @transform_4(%arg0: i32) -> (i32, i32) {
    %c0_i32 = arith.constant 0 : i32
    %c0_i32_0 = arith.constant 0 : i32
    %c0_i32_1 = arith.constant 0 : i32
    return %c0_i32, %c0_i32_0 : i32, i32
  }
  func.func @transform_5(%arg0: i32) -> (i32, i32) {
    %c0_i32 = arith.constant 0 : i32
    %c0_i32_0 = arith.constant 0 : i32
    %c0_i32_1 = arith.constant 0 : i32
    return %c0_i32, %c0_i32_0 : i32, i32
  }
  func.func @transform_6(%arg0: i32) -> (i32, i32) {
    %c0_i32 = arith.constant 0 : i32
    %c0_i32_0 = arith.constant 0 : i32
    %c0_i32_1 = arith.constant 0 : i32
    return %c0_i32, %c0_i32_0 : i32, i32
  }
  func.func @transform_7(%arg0: i32) -> (i32, i32) {
    %c0_i32 = arith.constant 0 : i32
    %c0_i32_0 = arith.constant 0 : i32
    %c0_i32_1 = arith.constant 0 : i32
    return %c0_i32, %c0_i32_0 : i32, i32
  }
  func.func @transform_8(%arg0: i32) -> (i32, i32) {
    %c0_i32 = arith.constant 0 : i32
    %c0_i32_0 = arith.constant 0 : i32
    %c0_i32_1 = arith.constant 0 : i32
    return %c0_i32, %c0_i32_0 : i32, i32
  }
  func.func @transform_9(%arg0: i32) -> (i32, i32) {
    %c0_i32 = arith.constant 0 : i32
    %c0_i32_0 = arith.constant 0 : i32
    %c0_i32_1 = arith.constant 0 : i32
    return %c0_i32, %c0_i32_0 : i32, i32
  }
  func.func @transform_10(%arg0: i32) -> (i32, i32) {
    %c0_i32 = arith.constant 0 : i32
    %c0_i32_0 = arith.constant 0 : i32
    %c0_i32_1 = arith.constant 0 : i32
    return %c0_i32, %c0_i32_0 : i32, i32
  }
  func.func @transform_11(%arg0: i32) -> (i32, i32) {
    %c0_i32 = arith.constant 0 : i32
    %c0_i32_0 = arith.constant 0 : i32
    %c0_i32_1 = arith.constant 0 : i32
    return %c0_i32, %c0_i32_0 : i32, i32
  }
  func.func @transform_12(%arg0: i32) -> (i32, i32) {
    %c0_i32 = arith.constant 0 : i32
    %c0_i32_0 = arith.constant 0 : i32
    %c0_i32_1 = arith.constant 0 : i32
    return %c0_i32, %c0_i32_0 : i32, i32
  }
  func.func @transform_13(%arg0: i32) -> (i32, i32) {
    %c0_i32 = arith.constant 0 : i32
    %c0_i32_0 = arith.constant 0 : i32
    %c0_i32_1 = arith.constant 0 : i32
    return %c0_i32, %c0_i32_0 : i32, i32
  }
  func.func @transform_14(%arg0: i32) -> (i32, i32) {
    %c0_i32 = arith.constant 0 : i32
    %c0_i32_0 = arith.constant 0 : i32
    %c0_i32_1 = arith.constant 0 : i32
    return %c0_i32, %c0_i32_0 : i32, i32
  }
  func.func @transform_15(%arg0: i32) -> (i32, i32) {
    %c0_i32 = arith.constant 0 : i32
    %c0_i32_0 = arith.constant 0 : i32
    %c0_i32_1 = arith.constant 0 : i32
    return %c0_i32, %c0_i32_0 : i32, i32
  }
  func.func @transform_16(%arg0: i32) -> (i32, i32) {
    %c0_i32 = arith.constant 0 : i32
    %c0_i32_0 = arith.constant 0 : i32
    %c0_i32_1 = arith.constant 0 : i32
    return %c0_i32, %c0_i32_0 : i32, i32
  }
  func.func @transform_17(%arg0: i32) -> (i32, i32) {
    %c0_i32 = arith.constant 0 : i32
    %c0_i32_0 = arith.constant 0 : i32
    return %arg0, %c0_i32 : i32, i32
  }
}

</mosaic_0001>

<bundles_post_ra>
// kernel: tpu_custom_call.1
= control target key start
LH: loop header
LB: loop body
LE: loop exit
PB: predicated region body
PF: predicated region fallthrough
CT: control target
= control target key end

     0   :  { %s1854_s0 = inlined_call_operand.vmem [shape: f32[8,256], index: 0, kind: input, shape index: {}]   ;;  %s1855_s1 = inlined_call_operand.vmem [shape: f32[256,16], index: 1, kind: input, shape index: {}]   ;;  %s1856_s2 = inlined_call_operand.vmem [shape: f32[256,16], index: 2, kind: input, shape index: {}]   ;;  %s1857_s3 = inlined_call_operand.vmem [shape: f32[16,256], index: 3, kind: input, shape index: {}]   ;;  %s1858_s4 = inlined_call_operand.vmem [shape: f32[16,256], index: 4, kind: input, shape index: {}]   ;;  %s1859_s5 = inlined_call_operand.vmem [shape: f32[8,8], index: 5, kind: input, shape index: {}]   ;;  %s1860_s6 = inlined_call_operand.vmem [shape: f32[8,1], index: 6, kind: input, shape index: {}]   ;;  %s1861_s7 = inlined_call_operand.vmem [shape: f32[8,8], index: 7, kind: input, shape index: {}]   ;;  %s1862_s8 = inlined_call_operand.vmem [shape: f32[8,1], index: 8, kind: input, shape index: {}]   ;;  %s1863_s9 = inlined_call_operand.vmem [shape: f32[16,8], index: 9, kind: input, shape index: {}]   ;;  %s1864_s10 = inlined_call_operand.vmem [shape: f32[16,1], index: 10, kind: input, shape index: {}]   ;;  %s1865_s11 = inlined_call_operand.vmem [shape: f32[16,8], index: 11, kind: input, shape index: {}]   ;;  %s1866_s12 = inlined_call_operand.vmem [shape: f32[16,1], index: 12, kind: input, shape index: {}]   ;;  %s1867_s13 = inlined_call_operand.vmem [shape: f32[8,8], index: 13, kind: input, shape index: {}]   ;;  %s1868_s14 = inlined_call_operand.vmem [shape: f32[9,256], index: 14, kind: input, shape index: {}]   ;;  %s1869_s15 = inlined_call_operand.vmem [shape: f32[8,144], index: 15, kind: input, shape index: {}]   ;;  %s1870_s16 = inlined_call_operand.vmem [shape: f32[8,1], index: 16, kind: input, shape index: {}]   ;;  %s1871_s17 = inlined_call_operand.hbm [shape: f32[8,256], index: 17, kind: output, shape index: {}]  }
   0x1   :  { %1874 = sst [smem:[#allocation5_spill]] %s1854_s0 }
   0x2   :  { %1875 = sst [smem:[#allocation6_spill]] %s1855_s1 }
   0x3   :  { %s1876_s26 = sld [smem:[#allocation5_spill]]  ;;  %v213_v4 = vld [vmem:[%s1856_s2 + $0x78] sm:$0xff]  ;;  %v212_v8 = vld [vmem:[%s1856_s2 + $0x70] sm:$0xff]  ;;  %v211_v12 = vld [vmem:[%s1856_s2 + $0x68] sm:$0xff]  ;;  %vm73_vm0 = vcmask 64512  }
   0x4   :  { %s1877_s30 = sld [smem:[#allocation6_spill]]  ;;  %v229_v5 = vld [vmem:[%s1856_s2 + $0xf8] sm:$0xff]  ;;  %v228_v9 = vld [vmem:[%s1856_s2 + $0xf0] sm:$0xff]  ;;  %v227_v13 = vld [vmem:[%s1856_s2 + $0xe8] sm:$0xff] }
   0x5   :  { %v210_v16 = vld [vmem:[%s1856_s2 + $0x60] sm:$0xff]  ;;  %v209_v20 = vld [vmem:[%s1856_s2 + $0x58] sm:$0xff]  ;;  %v208_v24 = vld [vmem:[%s1856_s2 + $0x50] sm:$0xff] }
   0x6   :  { %v226_v17 = vld [vmem:[%s1856_s2 + $0xe0] sm:$0xff]  ;;  %v225_v21 = vld [vmem:[%s1856_s2 + $0xd8] sm:$0xff]  ;;  %v224_v25 = vld [vmem:[%s1856_s2 + $0xd0] sm:$0xff] }
   0x7   :  { %v207_v28 = vld [vmem:[%s1856_s2 + $0x48] sm:$0xff]  ;;  %v206_v32 = vld [vmem:[%s1856_s2 + $0x40] sm:$0xff]  ;;  %v205_v37 = vld [vmem:[%s1856_s2 + $0x38] sm:$0xff] }
   0x8   :  { %v223_v29 = vld [vmem:[%s1856_s2 + $0xc8] sm:$0xff]  ;;  %v222_v33 = vld [vmem:[%s1856_s2 + $0xc0] sm:$0xff]  ;;  %v221_v38 = vld [vmem:[%s1856_s2 + $0xb8] sm:$0xff] }
   0x9   :  { %v1342_v0 = vld [vmem:[%s1876_s26] sm:$0xff]  ;;  %v1347_v1 = vld [vmem:[%s1876_s26 + $0x8] sm:$0xff]  ;;  %v204_v41 = vld [vmem:[%s1856_s2 + $0x30] sm:$0xff] }
   0xa   :  { %v141_v2 = vld [vmem:[%s1877_s30 + $0x78] sm:$0xff]  ;;  %95 = vmatpush.msra.mxu0 %v1342_v0  ;;  %118 = vmatpush.msra.mxu1 %v1347_v1  ;;  %v140_v6 = vld [vmem:[%s1877_s30 + $0x70] sm:$0xff]  ;;  %v139_v10 = vld [vmem:[%s1877_s30 + $0x68] sm:$0xff] }
   0xb   :  { %v157_v3 = vld [vmem:[%s1877_s30 + $0xf8] sm:$0xff]  ;;  %158 = vmatpush.msra.mxu2 %v141_v2  ;;  %v156_v7 = vld [vmem:[%s1877_s30 + $0xf0] sm:$0xff]  ;;  %v155_v11 = vld [vmem:[%s1877_s30 + $0xe8] sm:$0xff] }
   0xc   :  { %178 = vmatpush.msra.mxu3 %v157_v3  ;;  %230 = vmatpush.msrb.mxu0 %v213_v4  ;;  %v138_v14 = vld [vmem:[%s1877_s30 + $0x60] sm:$0xff]  ;;  %v137_v18 = vld [vmem:[%s1877_s30 + $0x58] sm:$0xff]  ;;  %v136_v22 = vld [vmem:[%s1877_s30 + $0x50] sm:$0xff] }
   0xd   :  { %250 = vmatpush.msrb.mxu1 %v229_v5  ;;  %159 = vmatpush.msra.mxu2 %v140_v6  ;;  %v154_v15 = vld [vmem:[%s1877_s30 + $0xe0] sm:$0xff]  ;;  %v153_v19 = vld [vmem:[%s1877_s30 + $0xd8] sm:$0xff]  ;;  %v152_v23 = vld [vmem:[%s1877_s30 + $0xd0] sm:$0xff] }
   0xe   :  { %179 = vmatpush.msra.mxu3 %v156_v7  ;;  %231 = vmatpush.msrb.mxu0 %v212_v8  ;;  %v135_v26 = vld [vmem:[%s1877_s30 + $0x48] sm:$0xff]  ;;  %v134_v30 = vld [vmem:[%s1877_s30 + $0x40] sm:$0xff]  ;;  %v133_v35 = vld [vmem:[%s1877_s30 + $0x38] sm:$0xff] }
   0xf   :  { %251 = vmatpush.msrb.mxu1 %v228_v9  ;;  %160 = vmatpush.msra.mxu2 %v139_v10  ;;  %v151_v27 = vld [vmem:[%s1877_s30 + $0xc8] sm:$0xff]  ;;  %v150_v31 = vld [vmem:[%s1877_s30 + $0xc0] sm:$0xff]  ;;  %v149_v36 = vld [vmem:[%s1877_s30 + $0xb8] sm:$0xff] }
  0x10   :  { %180 = vmatpush.msra.mxu3 %v155_v11  ;;  %232 = vmatpush.msrb.mxu0 %v211_v12  ;;  %v59_v34 = vld [vmem:[%s1863_s9] sm:$0xff]  ;;  %v132_v39 = vld [vmem:[%s1877_s30 + $0x30] sm:$0xff]  ;;  %v131_v43 = vld [vmem:[%s1877_s30 + $0x28] sm:$0xff] }
  0x11   :  { %252 = vmatpush.msrb.mxu1 %v227_v13  ;;  %161 = vmatpush.msra.mxu2 %v138_v14  ;;  %v148_v40 = vld [vmem:[%s1877_s30 + $0xb0] sm:$0xff]  ;;  %v147_v44 = vld [vmem:[%s1877_s30 + $0xa8] sm:$0xff]  ;;  %v130_v47 = vld [vmem:[%s1877_s30 + $0x20] sm:$0xff] }
  0x12   :  { %181 = vmatpush.msra.mxu3 %v154_v15  ;;  %233 = vmatpush.msrb.mxu0 %v210_v16  ;;  %v220_v42 = vld [vmem:[%s1856_s2 + $0xb0] sm:$0xff]  ;;  %v203_v45 = vld [vmem:[%s1856_s2 + $0x28] sm:$0xff]  ;;  %v146_v48 = vld [vmem:[%s1877_s30 + $0xa0] sm:$0xff] }
  0x13   :  { %253 = vmatpush.msrb.mxu1 %v226_v17  ;;  %162 = vmatpush.msra.mxu2 %v137_v18  ;;  %v219_v46 = vld [vmem:[%s1856_s2 + $0xa8] sm:$0xff]  ;;  %v202_v49 = vld [vmem:[%s1856_s2 + $0x20] sm:$0xff] }
  0x14   :  { %182 = vmatpush.msra.mxu3 %v153_v19  ;;  %234 = vmatpush.msrb.mxu0 %v209_v20  ;;  %v218_v50 = vld [vmem:[%s1856_s2 + $0xa0] sm:$0xff] }
  0x15   :  { %254 = vmatpush.msrb.mxu1 %v225_v21  ;;  %163 = vmatpush.msra.mxu2 %v136_v22 }
  0x16   :  { %183 = vmatpush.msra.mxu3 %v152_v23  ;;  %235 = vmatpush.msrb.mxu0 %v208_v24 }
  0x17   :  { %255 = vmatpush.msrb.mxu1 %v224_v25  ;;  %164 = vmatpush.msra.mxu2 %v135_v26 }
  0x18   :  { %184 = vmatpush.msra.mxu3 %v151_v27  ;;  %236 = vmatpush.msrb.mxu0 %v207_v28 }
  0x19   :  { %256 = vmatpush.msrb.mxu1 %v223_v29  ;;  %165 = vmatpush.msra.mxu2 %v134_v30 }
  0x1a   :  { %185 = vmatpush.msra.mxu3 %v150_v31  ;;  %237 = vmatpush.msrb.mxu0 %v206_v32 }
  0x1b   :  { %257 = vmatpush.msrb.mxu1 %v222_v33  ;;  %1145 = vmatmul.msk.f32.vlgmr.msra.gmra.mxu0 %vm73_vm0, %v59_v34 }
  0x1c   :  { %1147 = vmatmul.msk.f32.vlgmr.msra.gmra.mxu1 %vm73_vm0, %v59_v34  ;;  %166 = vmatpush.msra.mxu2 %v133_v35 }
  0x1d   :  { %186 = vmatpush.msra.mxu3 %v149_v36  ;;  %238 = vmatpush.msrb.mxu0 %v205_v37 }
  0x1e   :  { %258 = vmatpush.msrb.mxu1 %v221_v38  ;;  %167 = vmatpush.msra.mxu2 %v132_v39 }
  0x1f   :  { %187 = vmatpush.msra.mxu3 %v148_v40  ;;  %239 = vmatpush.msrb.mxu0 %v204_v41 }
  0x20   :  { %259 = vmatpush.msrb.mxu1 %v220_v42  ;;  %168 = vmatpush.msra.mxu2 %v131_v43 }
  0x21   :  { %188 = vmatpush.msra.mxu3 %v147_v44 }
  0x22   :  { %22 = vsyncpa [#allocation3], 0  ;;  %240 = vmatpush.msrb.mxu0 %v203_v45  ;;  %260 = vmatpush.msrb.mxu1 %v219_v46  ;;  %v60_v51 = vld [vmem:[%s1863_s9 + $0x8] sm:$0xff]  ;;  %v129_v52 = vld [vmem:[%s1877_s30 + $0x18] sm:$0xff]  ;;  %v446_v7 = vadd.f32 %v1347_v1, %v1342_v0  ;;  %v1237_v8 = vmov 0   ;;  %v1238_v28 = vmov 256.0  }
  0x23   :  { %169 = vmatpush.msra.mxu2 %v130_v47  ;;  %189 = vmatpush.msra.mxu3 %v146_v48  ;;  %v145_v53 = vld [vmem:[%s1877_s30 + $0x98] sm:$0xff]  ;;  %v128_v56 = vld [vmem:[%s1877_s30 + $0x10] sm:$0xff]  ;;  %v127_v60 = vld [vmem:[%s1877_s30 + $0x8] sm:$0xff]  ;;  %1195 = vrcp.f32 %v1238_v28  ;;  %vm334_vm2 = vcmask 130048   ;;  %vm490_vm3 = vcmask 7168   ;;  %vm517_vm4 = vcmask 27648  }
  0x24   :  { %241 = vmatpush.msrb.mxu0 %v202_v49  ;;  %261 = vmatpush.msrb.mxu1 %v218_v50  ;;  %v201_v54 = vld [vmem:[%s1856_s2 + $0x18] sm:$0xff]  ;;  %v144_v57 = vld [vmem:[%s1877_s30 + $0x90] sm:$0xff]  ;;  %v143_v61 = vld [vmem:[%s1877_s30 + $0x88] sm:$0xff]  ;;  %vm521_vm5 = vcmask 1043456   ;;  %vm557_vm10 = vcmask 31744   ;;  %s1241_s26 = smov 112  }
  0x25   :  { %v217_v55 = vld [vmem:[%s1856_s2 + $0x98] sm:$0xff]  ;;  %1146 = vmatmul.msk.f32.gmra.mxu0 %vm73_vm0, %v60_v51  ;;  %1148 = vmatmul.msk.f32.gmra.mxu1 %vm73_vm0, %v60_v51  ;;  %v200_v58 = vld [vmem:[%s1856_s2 + $0x10] sm:$0xff]  ;;  %v199_v62 = vld [vmem:[%s1856_s2 + $0x8] sm:$0xff]  ;;  %s1242_s27 = smov 1   ;;  %s1244_s28 = smov 15   ;;  %vm994_vm15 = vcmask 916480  }
  0x26   :  { %170 = vmatpush.msra.mxu2 %v129_v52  ;;  %190 = vmatpush.msra.mxu3 %v145_v53  ;;  %v216_v59 = vld [vmem:[%s1856_s2 + $0x90] sm:$0xff]  ;;  %v215_v63 = vld [vmem:[%s1856_s2 + $0x88] sm:$0xff]  ;;  %v126_v2 = vld [vmem:[%s1877_s30] sm:$0xff]  ;;  %s1245_s29 = smov 16   ;;  %s1246_s0 = smov 17  }
  0x27   :  { %242 = vmatpush.msrb.mxu0 %v201_v54  ;;  %262 = vmatpush.msrb.mxu1 %v217_v55  ;;  %v142_v3 = vld [vmem:[%s1877_s30 + $0x80] sm:$0xff]  ;;  %v332_v22 = vld [vmem:[%s1857_s3 + $0x10] sm:$0xff]  ;;  %v333_v23 = vld [vmem:[%s1857_s3 + $0x18] sm:$0xff]  ;;  %s1247_s18 = smov 111   ;;  %s1136_s25 = sshll.u32 %s1871_s17, 4  ;;  %s1137_s25 = int_to_ptr.hbm [resolvable:$true] %s1136_s25 }
  0x28   :  { %171 = vmatpush.msra.mxu2 %v128_v56  ;;  %191 = vmatpush.msra.mxu3 %v144_v57  ;;  %v198_v4 = vld [vmem:[%s1856_s2] sm:$0xff]  ;;  %v381_v24 = vld [vmem:[%s1858_s4 + $0x18] sm:$0xff]  ;;  %v331_v26 = vld [vmem:[%s1857_s3 + $0x8] sm:$0xff] }
  0x29   :  { %243 = vmatpush.msrb.mxu0 %v200_v58  ;;  %263 = vmatpush.msrb.mxu1 %v216_v59  ;;  %v214_v5 = vld [vmem:[%s1856_s2 + $0x80] sm:$0xff]  ;;  %v379_v27 = vld [vmem:[%s1858_s4 + $0x8] sm:$0xff]  ;;  %v380_v29 = vld [vmem:[%s1858_s4 + $0x10] sm:$0xff]  ;;  %v1196_v31 = vpop.eup %1195 }
  0x2a   :  { %172 = vmatpush.msra.mxu2 %v127_v60  ;;  %192 = vmatpush.msra.mxu3 %v143_v61  ;;  %v271_v6 = vld [vmem:[%s1860_s6] sm:$0xff]  ;;  %v450_v32 = vmul.f32 256.0, %v1196_v31  ;;  %vm454_vm1 = vweird.f32 %v1196_v31  ;;  %v458_v46 = vld [vmem:[%s1865_s11 + $0x8] sm:$0xff] }
  0x2b   :  { %244 = vmatpush.msrb.mxu0 %v199_v62  ;;  %264 = vmatpush.msrb.mxu1 %v215_v63  ;;  %v301_v11 = vld [vmem:[%s1862_s8] sm:$0xff]  ;;  %v460_v51 = vld [vmem:[%s1866_s12 + $0x8] sm:$0xff] }
  0x2c   :  { %173 = vmatpush.msra.mxu2 %v126_v2  ;;  %193 = vmatpush.msra.mxu3 %v142_v3  ;;  %v300_v17 = vld [vmem:[%s1861_s7] sm:$0xff]  ;;  %v451_v33 = vsub.f32 1.0, %v450_v32 }
  0x2d   :  { %174 = vmatmul.f32.vlgmr.msra.gmra.mxu2 %v1342_v0  ;;  %194 = vmatmul.f32.vlgmr.msra.gmra.mxu3 %v1347_v1  ;;  %v270_v21 = vld [vmem:[%s1859_s5] sm:$0xff]  ;;  %s1243_s5 = smov 127  }
  0x2e   :  { %245 = vmatpush.msrb.mxu0 %v198_v4  ;;  %265 = vmatpush.msrb.mxu1 %v214_v5  ;;  %v330_v25 = vld [vmem:[%s1857_s3] sm:$0xff]  ;;  %v452_v34 = vmul.f32 %v1196_v31, %v451_v33 }
  0x2f   :  { %246 = vmatmul.f32.vlgmr.msrb.gmra.mxu0 %v1342_v0  ;;  %266 = vmatmul.f32.vlgmr.msrb.gmra.mxu1 %v1347_v1  ;;  %v378_v30 = vld [vmem:[%s1858_s4] sm:$0xff] }
  0x30   :  { %1191 = vset.pattern.permute.xlu0 %v1237_v8  ;;  %1192 = vset.pattern.permute.xlu2 %v1237_v8  ;;  %v453_v36 = vadd.f32 %v1196_v31, %v452_v34  ;;  %v457_v45 = vld [vmem:[%s1865_s11] sm:$0xff]  ;;  %s1248_s11 = smov [#allocation2]  }
  0x31   :  { %274 = vperm.xlu0 %1191, %v271_v6   ;;  %447 = vadd.xlane.f32.xlu1 %v446_v7  ;;  %v459_v53 = vld [vmem:[%s1866_s12] sm:$0xff]  ;;  %s1134_s12 = sshll.u32 %s1248_s11, 4  ;;  %s1135_s12 = int_to_ptr.vmem [resolvable:$true] %s1134_s12 }
  0x32   :  { %352 = vmatpush.msra.mxu0 %v332_v22  ;;  %v455_v37 = vsel %vm454_vm1, %v1196_v31, %v453_v36  ;;  %vm944_vm1 = vcmask 1039360  }
  0x34   :  { %353 = vmatpush.msra.mxu0 %v330_v25 }
  0x36   :  { %399 = vmatpush.msrb.mxu0 %v380_v29 }
  0x38   :  { %400 = vmatpush.msrb.mxu0 %v378_v30 }
  0x39   :  { %304 = vperm.xlu0 %1191, %v301_v11   ;;  %v62_v11 = vld [vmem:[%s1864_s10 + $0x8] sm:$0xff] }
  0x98   :  { %v1562_v9 = vpop.f32.mrf.mxu0 }
  0x99   :  { %v1564_v10 = vpop.f32.mrf.mxu1 }
  0xa2   :  { %v1569_v12 = vpop.f32.mrf.mxu0  ;;  %v1571_v13 = vpop.f32.mrf.mxu1 }
  0xa3   :  { %v275_v35 = vpop.permute.xlu0 %274 }
  0xa4   :  { %v448_v38 = vpop.xlane.xlu1 %447 }
  0xa5   :  { %v456_v41 = vmul.f32 %v455_v37, %v448_v38 }
  0xab   :  { %v305_v39 = vpop.permute.xlu0 %304 }
  0xac   :  { %v247_v14 = vpop.f32.mrf.mxu0  ;;  %v267_v15 = vpop.f32.mrf.mxu1 }
  0xad   :  { %v268_v16 = vadd.f32 %v267_v15, %v247_v14 }
  0xaf   :  { %325 = vmatpush.msrb.mxu3 %v268_v16 }
  0xb0   :  { %1150 = vmatmul.msk.f32.vlgmr.msrb.gmra.mxu3 %vm73_vm0, %v300_v17  ;;  %v175_v18 = vpop.f32.mrf.mxu2  ;;  %v195_v19 = vpop.f32.mrf.mxu3 }
  0xb1   :  { %v196_v20 = vadd.f32 %v195_v19, %v175_v18  ;;  %419 = vmatpush.msra.mxu3 %v381_v24 }
  0xb3   :  { %295 = vmatpush.msra.mxu1 %v196_v20  ;;  %420 = vmatpush.msra.mxu3 %v379_v27 }
  0xb4   :  { %1149 = vmatmul.msk.f32.vlgmr.msra.gmra.mxu1 %vm73_vm0, %v270_v21 }
  0xb5   :  { %372 = vmatpush.msrb.mxu1 %v333_v23 }
  0xb7   :  { %373 = vmatpush.msrb.mxu1 %v331_v26 }
 0x131   :  { %v297_v40 = vpop.f32.mrf.mxu1 }
 0x132   :  { %v298_v42 = vadd.f32 %v297_v40, %v275_v35 }
 0x133   :  { %v327_v43 = vpop.f32.mrf.mxu3 }
 0x134   :  { %v328_v44 = vadd.f32 %v327_v43, %v305_v39  ;;  %1151 = vmatmul.msk.f32.vlgmr.msra.gmra.mxu0 %vm334_vm2, %v298_v42  ;;  %1152 = vmatmul.msk.f32.vlgmr.msrb.gmra.mxu1 %vm334_vm2, %v298_v42 }
 0x135   :  { %482 = vmatpush.msra.mxu0 %v456_v41 }
 0x136   :  { %1154 = vmatmul.msk.f32.vlgmr.msra.gmra.mxu3 %vm334_vm2, %v328_v44 }
 0x13c   :  { %1153 = vmatmul.msk.f32.vlgmr.msrb.gmra.mxu0 %vm334_vm2, %v328_v44 }
 0x144   :  { %1155 = vmatmul.msk.f32.vlgmr.msra.gmra.mxu0 %vm73_vm0, %v457_v45  ;;  %v61_v45 = vld [vmem:[%s1864_s10] sm:$0xff]  ;;  %s1239_s10 = smov 124  }
 0x14c   :  { %1156 = vmatmul.msk.f32.gmra.mxu0 %vm73_vm0, %v458_v46  ;;  %v607_v46 = vld [vmem:[%s1867_s13] sm:$0xff]  ;;  %s1240_s13 = smov 113   ;;  %vm969_vm0 = vcmask 924672  }
 0x1b1   :  { %v355_v47 = vpop.f32.mrf.mxu0  ;;  %v375_v56 = vpop.f32.mrf.mxu1 }
 0x1b9   :  { %v402_v48 = vpop.f32.mrf.mxu0  ;;  %v422_v14 = vpop.f32.mrf.mxu3 }
 0x1ba   :  { %v1617_v49 = vmul.f32 %v402_v48, %v355_v47  ;;  %v1636_v15 = vmul.f32 %v422_v14, %v375_v56 }
 0x1bc   :  { %v427_v16 = vmax.f32 %v1617_v49, %v1636_v15 }
 0x1c1   :  { %v484_v50 = vpop.f32.mrf.mxu0 }
 0x1c2   :  { %v1626_v55 = vadd.f32 %v484_v50, %v459_v53 }
 0x1c4   :  { %v659_v39 = vrot.slane %v1626_v55, 4 }
 0x1c9   :  { %v487_v52 = vpop.f32.mrf.mxu0 }
 0x1ca   :  { %v488_v54 = vadd.f32 %v487_v52, %v460_v51 }
 0x1cc   :  { %1157 = vmatpush.xpose.msk.msra.mxu1 %vm490_vm3, %v488_v54  ;;  %v660_v26 = vrot.slane %v488_v54, 4 }
 0x1cf   :  { %1158 = vmatmul.msk.f32.vlgmr.msra.gmra.mxu1 %vm490_vm3, %v1626_v55 }
 0x24c   :  { %v514_v57 = vpop.f32.mrf.mxu1 }
 0x24d   :  { %v518_v58 = vsel %vm517_vm4, %v514_v57, -inf }
 0x24e   :  { %519 = vmax.xlane.f32.xlu1 %v518_v58 }
 0x2c1   :  { %v520_v59 = vpop.xlane.xlu1 %519 }
 0x2c2   :  { %v522_v60 = vsel %vm521_vm5, %v520_v59, -inf }
 0x2c3   :  { %v523_v61 = vrot.slane %v522_v60, 4 }
 0x2c5   :  { %v524_v62 = vmax.f32 %v522_v60, %v523_v61 }
 0x2c7   :  { %v525_v63 = vrot.slane %v524_v62, 2 }
 0x2c9   :  { %v526_v2 = vmax.f32 %v524_v62, %v525_v63 }
 0x2cb   :  { %v527_v3 = vrot.slane %v526_v2, 1 }
 0x2cd   :  { %v528_v4 = vmax.f32 %v526_v2, %v527_v3 }
 0x2cf   :  { %v529_v5 = vsub.f32 %v514_v57, %v528_v4 }
 0x2d1   :  { %v530_v6 = vmul.f32 1.442695, %v529_v5 }
 0x2d3   :  { %1197 = vpow2.f32 %v530_v6 }
 0x2d9   :  { %v1198_v7 = vpop.eup %1197 }
 0x2da   :  { %v532_v8 = vsel %vm517_vm4, %v1198_v7, 0.0 }
 0x2db   :  { %533 = vadd.xlane.f32.xlu2 %v532_v8 }
 0x2f3   :  { %70 = vperm.xlu2 %1192, %v62_v11  }
 0x31c   :  { %428 = vmax.xlane.f32.xlu2 %v427_v16 }
 0x34e   :  { %v534_v17 = vpop.xlane.xlu2 %533 }
 0x34f   :  { %v535_v18 = vsel %vm521_vm5, %v534_v17, 0.0 }
 0x350   :  { %v536_v19 = vrot.slane %v535_v18, 4 }
 0x352   :  { %v537_v20 = vadd.f32 %v536_v19, %v535_v18 }
 0x354   :  { %v538_v21 = vrot.slane %v537_v20, 2 }
 0x356   :  { %v539_v22 = vadd.f32 %v538_v21, %v537_v20  ;;  %v71_v23 = vpop.permute.xlu2 %70 }
 0x357   :  { %v101_v24 = vadd.f32 %v1569_v12, %v71_v23  ;;  %v124_v25 = vadd.f32 %v1571_v13, %v71_v23 }
 0x358   :  { %v540_v27 = vrot.slane %v539_v22, 1 }
 0x359   :  { %1159 = vmatpush.msk.msrb.mxu2 %vm521_vm5, %v101_v24  ;;  %1161 = vmatpush.msk.msrb.mxu3 %vm521_vm5, %v124_v25  ;;  %v723_v38 = vrot.slane %v101_v24, 4  ;;  %v724_v40 = vrot.slane %v124_v25, 4 }
 0x35a   :  { %v541_v28 = vadd.f32 %v540_v27, %v539_v22 }
 0x35b   :  { %1167 = vmatpush.xpose.msk.msra.mxu3 %vm490_vm3, %v660_v26 }
 0x35c   :  { %1199 = vrcp.f32 %v541_v28  ;;  %v553_v32 = vand.u32 2147483648, %v541_v28  ;;  %v551_v34 = vand.u32 2147483647, %v541_v28  ;;  %vm547_vm7 = vweird.f32 %v541_v28 }
 0x35e   :  { %v554_v13 = vor.u32 1.1754944e-38, %v553_v32  ;;  %vm552_vm9 = vcmp.eq.f32.partialorder %v551_v34, 8.507059e+37 }
 0x362   :  { %v1200_v29 = vpop.eup %1199 }
 0x363   :  { %v543_v30 = vmul.f32 %v1200_v29, %v541_v28  ;;  %vm548_vm6 = vweird.f32 %v1200_v29 }
 0x364   :  { %vm549_vm8 = vmor %vm547_vm7, %vm548_vm6 }
 0x365   :  { %v544_v31 = vsub.f32 1.0, %v543_v30 }
 0x367   :  { %v545_v33 = vmul.f32 %v1200_v29, %v544_v31 }
 0x369   :  { %v546_v12 = vadd.f32 %v1200_v29, %v545_v33 }
 0x36b   :  { %v550_v35 = vsel %vm549_vm8, %v1200_v29, %v546_v12 }
 0x36c   :  { %v555_v36 = vsel %vm552_vm9, %v554_v13, %v550_v35 }
 0x36d   :  { %v556_v37 = vmul.f32 %v1198_v7, %v555_v36 }
 0x36f   :  { %1160 = vmatmul.msk.f32.vlgmr.msrb.gmra.mxu2 %vm557_vm10, %v556_v37  ;;  %1162 = vmatmul.msk.f32.vlgmr.msrb.gmra.mxu3 %vm557_vm10, %v556_v37 }
 0x370   :  { %1169 = vmatpush.msk.msrb.mxu3 %vm521_vm5, %v723_v38 }
 0x377   :  { %1168 = vmatmul.msk.f32.vlgmr.msra.gmra.mxu3 %vm490_vm3, %v659_v39 }
 0x38f   :  { %v429_v60 = vpop.xlane.xlu2 %428 }
 0x390   :  { %v430_v61 = vsub.f32 %v1617_v49, %v429_v60  ;;  %v431_v62 = vsub.f32 %v1636_v15, %v429_v60 }
 0x392   :  { %v432_v63 = vmul.f32 1.442695, %v430_v61  ;;  %v434_v2 = vmul.f32 1.442695, %v431_v62  ;;  %v1764_v61 = vld [vmem:[%s1868_s14] sm:$0xff]  ;;  %v1769_v62 = vld [vmem:[%s1868_s14 + $0x8] sm:$0xff] }
 0x3f2   :  { %v584_v41 = vpop.f32.mrf.mxu2  ;;  %v604_v42 = vpop.f32.mrf.mxu3 }
 0x3f3   :  { %1163 = vmatpush.msk.msrb.mxu1 %vm521_vm5, %v584_v41  ;;  %1165 = vmatpush.msk.msra.mxu2 %vm521_vm5, %v604_v42 }
 0x3f4   :  { %1164 = vmatmul.msk.f32.vlgmr.msrb.gmra.mxu1 %vm557_vm10, %v607_v46  ;;  %1166 = vmatmul.msk.f32.vlgmr.msra.gmra.mxu2 %vm557_vm10, %v607_v46 }
 0x3f5   :  { %1171 = vmatpush.msk.msra.mxu1 %vm521_vm5, %v724_v40 }
 0x3fa   :  { %v682_v43 = vpop.f32.mrf.mxu3 }
 0x3fb   :  { %v685_v44 = vsel %vm517_vm4, %v682_v43, -inf }
 0x3fc   :  { %686 = vmax.xlane.f32.xlu0 %v685_v44 }
 0x410   :  { %65 = vperm.xlu0 %1191, %v61_v45  }
 0x46f   :  { %v687_v47 = vpop.xlane.xlu0 %686 }
 0x470   :  { %v688_v48 = vsel %vm521_vm5, %v687_v47, -inf }
 0x471   :  { %v689_v50 = vrot.slane %v688_v48, 4 }
 0x473   :  { %v690_v51 = vmax.f32 %v688_v48, %v689_v50 }
 0x475   :  { %v691_v52 = vrot.slane %v690_v51, 2 }
 0x477   :  { %v692_v53 = vmax.f32 %v690_v51, %v691_v52  ;;  %v654_v39 = vpop.f32.mrf.mxu2 }
 0x478   :  { %v658_v40 = vadd.f32 %v654_v39, %v1347_v1 }
 0x479   :  { %v693_v54 = vrot.slane %v692_v53, 1 }
 0x47b   :  { %v694_v55 = vmax.f32 %v692_v53, %v693_v54 }
 0x47d   :  { %v695_v56 = vsub.f32 %v682_v43, %v694_v55 }
 0x47f   :  { %v696_v57 = vmul.f32 1.442695, %v695_v56 }
 0x481   :  { %1201 = vpow2.f32 %v696_v57 }
 0x482   :  { %1203 = vpow2.f32 %v432_v63  ;;  %v66_v30 = vpop.permute.xlu0 %65 }
 0x483   :  { %1205 = vpow2.f32 %v434_v2  ;;  %v98_v32 = vadd.f32 %v1562_v9, %v66_v30  ;;  %v121_v33 = vadd.f32 %v1564_v10, %v66_v30  ;;  %v634_v9 = vpop.f32.mrf.mxu1  ;;  %v1005_v2 = vperm.slane %v1764_v61, 7 }
 0x484   :  { %v657_v44 = vadd.f32 %v634_v9, %v1342_v0 }
 0x487   :  { %v1202_v58 = vpop.eup %1201 }
 0x488   :  { %v698_v59 = vsel %vm517_vm4, %v1202_v58, 0.0  ;;  %v1204_v3 = vpop.eup %1203  ;;  %vm891_vm4 = vcmask 121856  }
 0x489   :  { %699 = vadd.xlane.f32.xlu1 %v698_v59  ;;  %v1206_v4 = vpop.eup %1205 }
 0x48a   :  { %v436_v5 = vadd.f32 %v1206_v4, %v1204_v3 }
 0x4a2   :  { %772 = vrot.lane.b32.xlu1 %v607_v46, %s1239_s10 }
 0x4cc   :  { %437 = vadd.xlane.f32.xlu1 %v436_v5 }
 0x4fc   :  { %v700_v6 = vpop.xlane.xlu1 %699 }
 0x4fd   :  { %v701_v7 = vsel %vm521_vm5, %v700_v6, 0.0 }
 0x4fe   :  { %v702_v8 = vrot.slane %v701_v7, 4 }
 0x500   :  { %v703_v11 = vadd.f32 %v702_v8, %v701_v7 }
 0x502   :  { %v704_v14 = vrot.slane %v703_v11, 2 }
 0x504   :  { %v705_v16 = vadd.f32 %v704_v14, %v703_v11 }
 0x506   :  { %v706_v17 = vrot.slane %v705_v16, 1 }
 0x508   :  { %v707_v18 = vadd.f32 %v706_v17, %v705_v16 }
 0x50a   :  { %1207 = vrcp.f32 %v707_v18  ;;  %v719_v20 = vand.u32 2147483648, %v707_v18  ;;  %v717_v22 = vand.u32 2147483647, %v707_v18  ;;  %vm713_vm12 = vweird.f32 %v707_v18 }
 0x50c   :  { %v720_v24 = vor.u32 1.1754944e-38, %v719_v20  ;;  %vm718_vm14 = vcmp.eq.f32.partialorder %v717_v22, 8.507059e+37  ;;  %v981_v20 = vperm.slane %v1769_v62, 6 }
 0x510   :  { %v1208_v49 = vpop.eup %1207 }
 0x511   :  { %v709_v15 = vmul.f32 %v1208_v49, %v707_v18  ;;  %vm714_vm11 = vweird.f32 %v1208_v49 }
 0x512   :  { %vm715_vm13 = vmor %vm713_vm12, %vm714_vm11 }
 0x513   :  { %v710_v19 = vsub.f32 1.0, %v709_v15 }
 0x514   :  { %v773_v28 = vpop.permute.xlu1 %772 }
 0x515   :  { %v711_v21 = vmul.f32 %v1208_v49, %v710_v19  ;;  %v980_v19 = vperm.slane %v1764_v61, 6 }
 0x517   :  { %v712_v23 = vadd.f32 %v1208_v49, %v711_v21 }
 0x519   :  { %v716_v25 = vsel %vm715_vm13, %v1208_v49, %v712_v23 }
 0x51a   :  { %v721_v26 = vsel %vm718_vm14, %v720_v24, %v716_v25 }
 0x51b   :  { %v722_v27 = vmul.f32 %v1202_v58, %v721_v26 }
 0x51d   :  { %1170 = vmatmul.msk.f32.vlgmr.msrb.gmra.mxu3 %vm557_vm10, %v722_v27  ;;  %1172 = vmatmul.msk.f32.vlgmr.msra.gmra.mxu1 %vm557_vm10, %v722_v27 }
 0x53f   :  { %v438_v29 = vpop.xlane.xlu1 %437 }
 0x540   :  { %1209 = vrcp.f32 %v438_v29 }
 0x546   :  { %v1210_v31 = vpop.eup %1209 }
 0x547   :  { %v440_v34 = vmul.f32 %v1210_v31, %v1204_v3  ;;  %v441_v12 = vmul.f32 %v1210_v31, %v1206_v4  ;;  %v1006_v3 = vperm.slane %v1769_v62, 7  ;;  %v955_v31 = vperm.slane %v1764_v61, 5 }
 0x549   :  { %v442_v13 = vmul.f32 %v440_v34, %v98_v32  ;;  %v443_v35 = vmul.f32 %v441_v12, %v121_v33  ;;  %v956_v32 = vperm.slane %v1769_v62, 5 }
 0x54b   :  { %v1673_v36 = vadd.f32 %v442_v13, %v1342_v0  ;;  %v1676_v37 = vadd.f32 %v443_v35, %v1347_v1  ;;  %v1038_v0 = vld [vmem:[%s1870_s16] sm:$0xff] }
 0x54d   :  { %963 = vrot.lane.b32.xlu2 %v1676_v37, %s1240_s13  ;;  %988 = vrot.lane.b32.xlu1 %v1676_v37, %s1241_s26 }
 0x54e   :  { %986 = vrot.lane.b32.xlu0 %v1673_v36, %s1241_s26 }
 0x555   :  { %912 = vrot.lane.b32.xlu2 %v1673_v36, %s1242_s27  ;;  %936 = vrot.lane.b32.xlu1 %v1673_v36, %s1243_s5 }
 0x556   :  { %961 = vrot.lane.b32.xlu0 %v1673_v36, %s1240_s13 }
 0x55d   :  { %881 = vrot.lane.b32.xlu2 %v1676_v37, %s1244_s28  ;;  %887 = vrot.lane.b32.xlu1 %v1673_v36, %s1244_s28 }
 0x55e   :  { %938 = vrot.lane.b32.xlu0 %v1676_v37, %s1243_s5 }
 0x565   :  { %857 = vrot.lane.b32.xlu1 %v1676_v37, %s1245_s29 }
 0x566   :  { %906 = vrot.lane.b32.xlu0 %v1676_v37, %s1242_s27 }
 0x56e   :  { %863 = vrot.lane.b32.xlu0 %v1673_v36, %s1245_s29 }
 0x59a   :  { %v769_v10 = vpop.f32.mrf.mxu1 }
 0x59b   :  { %1175 = vmatpush.msk.msra.mxu3 %vm521_vm5, %v769_v10 }
 0x59c   :  { %1176 = vmatmul.msk.f32.vlgmr.msra.gmra.mxu3 %vm557_vm10, %v773_v28 }
 0x5a0   :  { %v749_v38 = vpop.f32.mrf.mxu3 }
 0x5a1   :  { %1173 = vmatpush.msk.msrb.mxu2 %vm521_vm5, %v749_v38  ;;  %vm1019_vm5 = vcmask 908288  }
 0x5a2   :  { %1174 = vmatmul.msk.f32.vlgmr.msrb.gmra.mxu2 %vm557_vm10, %v773_v28 }
 0x5a7   :  { %v964_v1 = vpop.permute.xlu2 %963 }
 0x5af   :  { %v1747_v47 = vpop.permute.xlu2 %912 }
 0x5b7   :  { %v1749_v50 = vpop.permute.xlu2 %881 }
 0x5bf   :  { %v989_v51 = vpop.permute.xlu1 %988 }
 0x5c0   :  { %v987_v46 = vpop.permute.xlu0 %986 }
 0x5c1   :  { %v995_v5 = vsel %vm994_vm15, %v987_v46, %v989_v51  ;;  %v1003_v6 = vsel %vm994_vm15, %v989_v51, %v987_v46  ;;  %v924_v51 = vperm.slane %v1764_v61, 3 }
 0x5c2   :  { %v1007_v16 = vmul.f32 %v1005_v2, %v995_v5  ;;  %v1008_v17 = vmul.f32 %v1006_v3, %v1003_v6 }
 0x5c7   :  { %v937_v54 = vpop.permute.xlu1 %936 }
 0x5c8   :  { %v962_v48 = vpop.permute.xlu0 %961 }
 0x5c9   :  { %v970_v23 = vsel %vm969_vm0, %v962_v48, %v964_v1  ;;  %v978_v24 = vsel %vm969_vm0, %v964_v1, %v962_v48 }
 0x5ca   :  { %v982_v29 = vmul.f32 %v980_v19, %v970_v23  ;;  %v983_v30 = vmul.f32 %v981_v20, %v978_v24 }
 0x5cf   :  { %v1753_v57 = vpop.permute.xlu1 %887 }
 0x5d0   :  { %v939_v52 = vpop.permute.xlu0 %938 }
 0x5d1   :  { %v945_v34 = vsel %vm944_vm1, %v937_v54, %v939_v52  ;;  %v953_v12 = vsel %vm944_vm1, %v939_v52, %v937_v54  ;;  %v925_v52 = vperm.slane %v1769_v62, 3 }
 0x5d7   :  { %v1759_v60 = vpop.permute.xlu1 %857 }
 0x5d8   :  { %v1751_v55 = vpop.permute.xlu0 %906 }
 0x5e0   :  { %v1757_v59 = vpop.permute.xlu0 %863 }
 0x61f   :  { %v819_v41 = vpop.f32.mrf.mxu3 }
 0x620   :  { %v1707_v42 = vadd.f32 %v819_v41, %v658_v40  ;;  %v957_v40 = vmul.f32 %v955_v31, %v945_v34  ;;  %v958_v41 = vmul.f32 %v956_v32, %v953_v12  ;;  %v1036_v12 = vld [vmem:[%s1869_s15] sm:$0xff] }
 0x622   :  { %967 = vrot.lane.b32.xlu2 %v1707_v42, %s1240_s13  ;;  %883 = vrot.lane.b32.xlu1 %v1707_v42, %s1244_s28 }
 0x623   :  { %992 = vrot.lane.b32.xlu0 %v1707_v42, %s1241_s26 }
 0x625   :  { %v799_v43 = vpop.f32.mrf.mxu2 }
 0x626   :  { %v1716_v45 = vadd.f32 %v799_v43, %v657_v44  ;;  %v930_v43 = vperm.slane %v1764_v61, 4  ;;  %v931_v44 = vperm.slane %v1769_v62, 4 }
 0x628   :  { %v935_v1 = vmul.f32 %v931_v44, %v1707_v42  ;;  %v932_v54 = vmul.f32 %v930_v43, %v1673_v36 }
 0x62a   :  { %942 = vrot.lane.b32.xlu2 %v1707_v42, %s1243_s5  ;;  %914 = vrot.lane.b32.xlu1 %v1716_v45, %s1242_s27 }
 0x62b   :  { %859 = vrot.lane.b32.xlu0 %v1707_v42, %s1245_s29 }
 0x632   :  { %908 = vrot.lane.b32.xlu2 %v1707_v42, %s1242_s27  ;;  %840 = vrot.lane.b32.xlu1 %v1716_v45, %s1246_s0 }
 0x633   :  { %965 = vrot.lane.b32.xlu0 %v1716_v45, %s1240_s13 }
 0x63a   :  { %990 = vrot.lane.b32.xlu2 %v1716_v45, %s1241_s26  ;;  %1015 = vrot.lane.b32.xlu1 %v1716_v45, %s1247_s18 }
 0x63b   :  { %940 = vrot.lane.b32.xlu0 %v1716_v45, %s1243_s5 }
 0x642   :  { %832 = vrot.lane.b32.xlu2 %v1707_v42, %s1246_s0  ;;  %1013 = vrot.lane.b32.xlu1 %v1676_v37, %s1247_s18 }
 0x643   :  { %889 = vrot.lane.b32.xlu0 %v1716_v45, %s1244_s28 }
 0x64a   :  { %838 = vrot.lane.b32.xlu2 %v1673_v36, %s1246_s0 }
 0x64b   :  { %830 = vrot.lane.b32.xlu0 %v1676_v37, %s1246_s0 }
 0x652   :  { %865 = vrot.lane.b32.xlu2 %v1716_v45, %s1245_s29 }
 0x653   :  { %1017 = vrot.lane.b32.xlu0 %v1707_v42, %s1247_s18  ;;  %v916_v42 = vsel %vm490_vm3, %v1747_v47, %v1751_v55 }
 0x654   :  { %v927_v5 = vmul.f32 %v925_v52, %v916_v42 }
 0x65a   :  { %1011 = vrot.lane.b32.xlu2 %v1673_v36, %s1247_s18  ;;  %v900_v36 = vperm.slane %v1764_v61, 2 }
 0x65b   :  { %1041 = vperm.xlu0 %1191, %v1038_v0   ;;  %v934_v0 = vmul.f32 %v930_v43, %v1716_v45  ;;  %v922_v45 = vsel %vm490_vm3, %v1751_v55, %v1747_v47  ;;  %v892_v47 = vsel %vm891_vm4, %v1753_v57, %v1749_v50  ;;  %v898_v55 = vsel %vm891_vm4, %v1749_v50, %v1753_v57  ;;  %v1037_v43 = vld [vmem:[%s1869_s15 + $0x8] sm:$0xff] }
 0x65c   :  { %v867_v50 = vsel %vm334_vm2, %v1757_v59, %v1759_v60  ;;  %v873_v57 = vsel %vm334_vm2, %v1759_v60, %v1757_v59 }
 0x67c   :  { %v968_v53 = vpop.permute.xlu2 %967 }
 0x684   :  { %v943_v56 = vpop.permute.xlu2 %942 }
 0x68c   :  { %v1755_v58 = vpop.permute.xlu2 %908 }
 0x694   :  { %v991_v63 = vpop.permute.xlu2 %990  ;;  %v884_v18 = vpop.permute.xlu1 %883 }
 0x695   :  { %v993_v4 = vpop.permute.xlu0 %992 }
 0x696   :  { %v996_v7 = vsel %vm994_vm15, %v991_v63, %v993_v4  ;;  %v1004_v8 = vsel %vm994_vm15, %v993_v4, %v991_v63  ;;  %v926_v4 = vmul.f32 %v924_v51, %v922_v45 }
 0x697   :  { %v1009_v11 = vmul.f32 %v1005_v2, %v996_v7  ;;  %v1010_v14 = vmul.f32 %v1006_v3, %v1004_v8 }
 0x699   :  { %1047 = vmatpush.msrb.mxu0 %v1009_v11  ;;  %1087 = vmatpush.msra.mxu2 %v1010_v14  ;;  %v875_v14 = vperm.slane %v1764_v61, 1 }
 0x69b   :  { %1048 = vmatpush.msrb.mxu0 %v1007_v16  ;;  %1088 = vmatpush.msra.mxu2 %v1008_v17 }
 0x69c   :  { %v1775_v15 = vpop.permute.xlu2 %832  ;;  %v915_v21 = vpop.permute.xlu1 %914 }
 0x69d   :  { %v1773_v49 = vpop.permute.xlu0 %859  ;;  %v917_v46 = vsel %vm490_vm3, %v915_v21, %v1755_v58  ;;  %v923_v48 = vsel %vm490_vm3, %v1755_v58, %v915_v21  ;;  %vm842_vm3 = vcmask 138240  }
 0x69e   :  { %v928_v58 = vmul.f32 %v924_v51, %v923_v48  ;;  %v929_v63 = vmul.f32 %v925_v52, %v917_v46 }
 0x6a4   :  { %v1781_v9 = vpop.permute.xlu2 %838  ;;  %v1783_v10 = vpop.permute.xlu1 %840 }
 0x6a5   :  { %v966_v22 = vpop.permute.xlu0 %965 }
 0x6a6   :  { %v971_v25 = vsel %vm969_vm0, %v966_v22, %v968_v53  ;;  %v979_v26 = vsel %vm969_vm0, %v968_v53, %v966_v22  ;;  %v851_v22 = vperm.slane %v1764_v61, 0 }
 0x6a7   :  { %v984_v27 = vmul.f32 %v980_v19, %v971_v25  ;;  %v985_v28 = vmul.f32 %v981_v20, %v979_v26  ;;  %v876_v20 = vperm.slane %v1769_v62, 1  ;;  %v844_v25 = vsel %vm842_vm3, %v1783_v10, %v1775_v15 }
 0x6a8   :  { %v850_v26 = vsel %vm842_vm3, %v1775_v15, %v1783_v10  ;;  %v1193_v15 = vld [vmem:[%s1868_s14 + $0x10] ss:$0 sm:$0xff] }
 0x6a9   :  { %1049 = vmatpush.msrb.mxu0 %v984_v27  ;;  %1089 = vmatpush.msra.mxu2 %v985_v28  ;;  %v877_v27 = vmul.f32 %v875_v14, %v873_v57  ;;  %v878_v28 = vmul.f32 %v876_v20, %v867_v50  ;;  %v855_v61 = vmul.f32 %v851_v22, %v850_v26 }
 0x6ab   :  { %1050 = vmatpush.msrb.mxu0 %v982_v29  ;;  %1090 = vmatpush.msra.mxu2 %v983_v30 }
 0x6ac   :  { %v866_v6 = vpop.permute.xlu2 %865  ;;  %v1016_v7 = vpop.permute.xlu1 %1015 }
 0x6ad   :  { %v941_v33 = vpop.permute.xlu0 %940  ;;  %v868_v16 = vsel %vm334_vm2, %v866_v6, %v1773_v49  ;;  %v874_v17 = vsel %vm334_vm2, %v1773_v49, %v866_v6  ;;  %v852_v49 = vperm.slane %v1769_v62, 0 }
 0x6ae   :  { %v946_v13 = vsel %vm944_vm1, %v941_v33, %v943_v56  ;;  %v954_v35 = vsel %vm944_vm1, %v943_v56, %v941_v33  ;;  %v933_v56 = vmul.f32 %v931_v44, %v1676_v37  ;;  %v901_v37 = vperm.slane %v1769_v62, 2 }
 0x6af   :  { %v959_v38 = vmul.f32 %v955_v31, %v946_v13  ;;  %v960_v39 = vmul.f32 %v956_v32, %v954_v35  ;;  %v879_v23 = vmul.f32 %v875_v14, %v874_v17  ;;  %v880_v24 = vmul.f32 %v876_v20, %v868_v16  ;;  %v1194_v31 = vld [vmem:[%s1868_s14 + $0x18] ss:$0 sm:$0xff] }
 0x6b0   :  { %v903_v19 = vmul.f32 %v901_v37, %v892_v47  ;;  %v856_v62 = vmul.f32 %v852_v49, %v844_v25 }
 0x6b1   :  { %1051 = vmatpush.msrb.mxu0 %v959_v38  ;;  %1091 = vmatpush.msra.mxu2 %v960_v39 }
 0x6b3   :  { %1052 = vmatpush.msrb.mxu0 %v957_v40  ;;  %1092 = vmatpush.msra.mxu2 %v958_v41 }
 0x6b4   :  { %v1012_v29 = vpop.permute.xlu2 %1011  ;;  %v1014_v30 = vpop.permute.xlu1 %1013 }
 0x6b5   :  { %1053 = vmatpush.msrb.mxu0 %v934_v0  ;;  %1093 = vmatpush.msra.mxu2 %v935_v1  ;;  %v890_v53 = vpop.permute.xlu0 %889  ;;  %v1020_v13 = vsel %vm1019_vm5, %v1012_v29, %v1014_v30  ;;  %v1028_v35 = vsel %vm1019_vm5, %v1014_v30, %v1012_v29 }
 0x6b6   :  { %v893_v2 = vsel %vm891_vm4, %v890_v53, %v884_v18  ;;  %v899_v3 = vsel %vm891_vm4, %v884_v18, %v890_v53  ;;  %v902_v18 = vmul.f32 %v900_v36, %v898_v55  ;;  %v1032_v40 = vmul.f32 %v1193_v15, %v1020_v13 }
 0x6b7   :  { %1054 = vmatpush.msrb.mxu0 %v932_v54  ;;  %1094 = vmatpush.msra.mxu2 %v933_v56  ;;  %v904_v8 = vmul.f32 %v900_v36, %v899_v3  ;;  %v905_v11 = vmul.f32 %v901_v37, %v893_v2  ;;  %v1033_v41 = vmul.f32 %v1194_v31, %v1028_v35 }
 0x6b9   :  { %1055 = vmatpush.msrb.mxu0 %v928_v58  ;;  %1095 = vmatpush.msra.mxu2 %v929_v63 }
 0x6bb   :  { %1056 = vmatpush.msrb.mxu0 %v926_v4  ;;  %1096 = vmatpush.msra.mxu2 %v927_v5 }
 0x6bd   :  { %1097 = vmatpush.msra.mxu2 %v905_v11  ;;  %v831_v21 = vpop.permute.xlu0 %830  ;;  %1057 = vmatpush.msrb.mxu0 %v904_v8 }
 0x6be   :  { %v843_v59 = vsel %vm842_vm3, %v1781_v9, %v831_v21  ;;  %v849_v60 = vsel %vm842_vm3, %v831_v21, %v1781_v9 }
 0x6bf   :  { %1058 = vmatpush.msrb.mxu0 %v902_v18  ;;  %1098 = vmatpush.msra.mxu2 %v903_v19  ;;  %v853_v32 = vmul.f32 %v851_v22, %v849_v60  ;;  %v854_v33 = vmul.f32 %v852_v49, %v843_v59 }
 0x6c1   :  { %1059 = vmatpush.msrb.mxu0 %v879_v23  ;;  %1099 = vmatpush.msra.mxu2 %v880_v24 }
 0x6c3   :  { %1060 = vmatpush.msrb.mxu0 %v877_v27  ;;  %1100 = vmatpush.msra.mxu2 %v878_v28 }
 0x6c5   :  { %1101 = vmatpush.msra.mxu2 %v856_v62  ;;  %v1018_v34 = vpop.permute.xlu0 %1017  ;;  %1061 = vmatpush.msrb.mxu0 %v855_v61 }
 0x6c6   :  { %v1021_v9 = vsel %vm1019_vm5, %v1016_v7, %v1018_v34  ;;  %v1029_v10 = vsel %vm1019_vm5, %v1018_v34, %v1016_v7 }
 0x6c7   :  { %v1034_v38 = vmul.f32 %v1193_v15, %v1021_v9  ;;  %v1035_v39 = vmul.f32 %v1194_v31, %v1029_v10  ;;  %1062 = vmatpush.msrb.mxu0 %v853_v32  ;;  %1102 = vmatpush.msra.mxu2 %v854_v33 }
 0x6c8   :  { %1063 = vmatmul.f32.vlgmr.msrb.gmra.mxu0 %v1036_v12  ;;  %1103 = vmatmul.f32.vlgmr.msra.gmra.mxu2 %v1036_v12 }
 0x6c9   :  { %1081 = vmatpush.msrb.mxu1 %v1034_v38  ;;  %1121 = vmatpush.msrb.mxu3 %v1035_v39 }
 0x6cb   :  { %1082 = vmatpush.msrb.mxu1 %v1032_v40  ;;  %1122 = vmatpush.msrb.mxu3 %v1033_v41 }
 0x6cc   :  { %1177 = vmatmul.msk.f32.vlgmr.msrb.gmra.mxu1 %vm334_vm2, %v1037_v43  ;;  %1178 = vmatmul.msk.f32.vlgmr.msrb.gmra.mxu3 %vm334_vm2, %v1037_v43 }
 0x6cd   :  { %v1042_v0 = vpop.permute.xlu0 %1041 }
 0x745   :  { %v1064_v44 = vpop.f32.mrf.mxu0 }
 0x746   :  { %v1065_v1 = vadd.f32 %v1064_v44, %v1042_v0 }
 0x749   :  { %v1084_v46 = vpop.f32.mrf.mxu1 }
 0x74a   :  { %v1085_v48 = vadd.f32 %v1084_v46, %v1065_v1 }
 0x74b   :  { %v1104_v51 = vpop.f32.mrf.mxu2 }
 0x74c   :  { %1127 = vst [vmem:[#allocation2] sm:$0xff] %v1085_v48  ;;  %v1105_v52 = vadd.f32 %v1104_v51, %v1042_v0 }
 0x74f   :  { %v1124_v53 = vpop.f32.mrf.mxu3 }
 0x750   :  { %v1125_v54 = vadd.f32 %v1124_v53, %v1105_v52 }
 0x752   :  { %1128 = vst [vmem:[#allocation2 + $0x8] sm:$0xff] %v1125_v54 }
 0x753   :  { %1139 = dma.vmem_to_hbm [thread:$0]  %s1135_s12, 256, %s1137_s25, [#allocation3]  }
 0x754   :  { %1235 = dma.done.wait [#allocation3], 256  }
 0x755   :  { %1236 = vsyncadd [#allocation3], 4294967040 }
 0x756   :  { %1144 = vsyncpa [#allocation3], 1 }

</bundles_post_ra>
